<compile_context>
chip_gen: v6e
topology: v6e:2x2x1
jax: 0.10.0
libtpu: 0.0.40
codegen_flags: <defaults>
</compile_context>

<pallas_src>
import functools

import jax
import jax.numpy as jnp
from jax.experimental import pallas as pl
from jax.experimental.pallas import tpu as pltpu


def _fused_lstm_kernel(*refs, num_layers, hidden_size, seq_len, batch):
    """Fused multi-layer LSTM over the full sequence inside one kernel invocation.

    refs layout:
      refs[0]                      : x        (S, B, In)            [input]
      refs[1 + 3*l + 0]            : W_ih_l^T (In_l, 4H)            [input, resident]
      refs[1 + 3*l + 1]            : W_hh_l^T (H, 4H)               [input, resident]
      refs[1 + 3*l + 2]            : bias_l   (1, 4H)               [input, resident]
      refs[1 + 3*L + 0]            : out      (S, B, H)             [output]
      refs[1 + 3*L + 1]            : h_n      (L, B, H)             [output]
      refs[1 + 3*L + 2]            : c_n      (L, B, H)             [output]
      refs[1 + 3*L + 3]            : seq_buf  (S, B, H)   VMEM scratch (inter-layer act.)
      refs[1 + 3*L + 4]            : gin_buf  (S, B, 4H)  VMEM scratch (input projections)
    """
    S, B, H, L = seq_len, batch, hidden_size, num_layers
    x_ref = refs[0]
    w_refs = refs[1:1 + 3 * L]
    out_ref, hN_ref, cN_ref = refs[1 + 3 * L:4 + 3 * L]
    seq_buf, gin_buf = refs[4 + 3 * L], refs[5 + 3 * L]

    for l in range(L):
        wih_ref = w_refs[3 * l + 0]   # (In_l, 4H)
        whh_ref = w_refs[3 * l + 1]   # (H, 4H)
        b_ref = w_refs[3 * l + 2]     # (1, 4H)

        # --- input projection for the whole sequence: one big GEMM + bias ---
        layer_in = x_ref[...] if l == 0 else seq_buf[...]          # (S, B, In_l)
        in_sz = layer_in.shape[-1]
        gin = jnp.dot(layer_in.reshape(S * B, in_sz), wih_ref[...],
                      preferred_element_type=jnp.float32) + b_ref[...]
        gin_buf[...] = gin.reshape(S, B, 4 * H)

        whh = whh_ref[...]                                          # hoisted, loop-invariant
        dst = out_ref if l == L - 1 else seq_buf

        # --- serial time recurrence: only h @ W_hh^T on the critical path ---
        def step(t, carry, _whh=whh, _dst=dst):
            h, c = carry
            # NOTE: gate slices are 32-lane sub-slices for the demo H=32; production
            # configs should use H that is a multiple of 128 for lane-aligned slicing.
            g = gin_buf[t] + jnp.dot(h, _whh, preferred_element_type=jnp.float32)
            i_g = jax.nn.sigmoid(g[:, 0 * H:1 * H])
            f_g = jax.nn.sigmoid(g[:, 1 * H:2 * H])
            g_g = jnp.tanh(g[:, 2 * H:3 * H])
            o_g = jax.nn.sigmoid(g[:, 3 * H:4 * H])
            c_new = f_g * c + i_g * g_g
            h_new = o_g * jnp.tanh(c_new)
            _dst[t] = h_new.astype(_dst.dtype)
            return (h_new, c_new)

        h0 = jnp.zeros((B, H), jnp.float32)
        c0 = jnp.zeros((B, H), jnp.float32)
        h_n, c_n = jax.lax.fori_loop(0, S, step, (h0, c0), unroll=True)

        # Written unconditionally at loop exit (one lane-dense store per layer).
        hN_ref[l] = h_n.astype(hN_ref.dtype)
        cN_ref[l] = c_n.astype(cN_ref.dtype)


def pointer_encoder_forward(x, params, hidden_size, num_layers):
    """PointerEncoder.forward.

    x : (B, S, input_size)  (batch_first, like the PyTorch module)
    params : list of (w_ih (4H,In_l), w_hh (4H,H), b_ih (4H,), b_hh (4H,)) per layer.
    Returns (lstm_out (B, S, H), (h_n (L, B, H), c_n (L, B, H))).
    """
    # TODO(synk): inter-layer dropout (training mode) is not implemented; this matches
    # dropout=0.0 / eval-mode behavior of torch.nn.LSTM.
    B, S, _ = x.shape
    H = hidden_size
    x_tm = jnp.transpose(x, (1, 0, 2)).astype(jnp.float32)          # (S, B, In)

    flat_w = []
    for (w_ih, w_hh, b_ih, b_hh) in params:
        flat_w.append(jnp.transpose(w_ih).astype(jnp.float32))      # (In_l, 4H)
        flat_w.append(jnp.transpose(w_hh).astype(jnp.float32))      # (H, 4H)
        flat_w.append((b_ih + b_hh).reshape(1, 4 * H).astype(jnp.float32))

    kernel = functools.partial(_fused_lstm_kernel, num_layers=num_layers,
                               hidden_size=H, seq_len=S, batch=B)

    # No grid: whole input/weights/outputs are VMEM-resident for the single invocation.
    out_tm, h_n, c_n = pl.pallas_call(
        kernel,
        out_shape=(
            jax.ShapeDtypeStruct((S, B, H), jnp.float32),            # time-major output
            jax.ShapeDtypeStruct((num_layers, B, H), jnp.float32),   # h_n
            jax.ShapeDtypeStruct((num_layers, B, H), jnp.float32),   # c_n
        ),
        scratch_shapes=[
            pltpu.VMEM((S, B, H), jnp.float32),        # inter-layer sequence buffer
            pltpu.VMEM((S, B, 4 * H), jnp.float32),    # precomputed input projections
        ],
    )(x_tm, *flat_w)

    lstm_out = jnp.transpose(out_tm, (1, 0, 2))                      # (B, S, H)
    return lstm_out, (h_n, c_n)


def _reference_forward(x, params, hidden_size, num_layers):
    """Pure-JAX reference LSTM (same semantics as torch.nn.LSTM, dropout=0)."""
    x_tm = jnp.transpose(x, (1, 0, 2)).astype(jnp.float32)
    H = hidden_size
    h_list, c_list = [], []
    layer_in = x_tm
    for l in range(num_layers):
        w_ih, w_hh, b_ih, b_hh = params[l]
        B = layer_in.shape[1]
        h0 = jnp.zeros((B, H), jnp.float32)
        c0 = jnp.zeros((B, H), jnp.float32)

        def step(carry, x_t):
            h, c = carry
            g = x_t @ w_ih.T + h @ w_hh.T + b_ih + b_hh
            i = jax.nn.sigmoid(g[:, 0 * H:1 * H])
            f = jax.nn.sigmoid(g[:, 1 * H:2 * H])
            gg = jnp.tanh(g[:, 2 * H:3 * H])
            o = jax.nn.sigmoid(g[:, 3 * H:4 * H])
            c_new = f * c + i * gg
            h_new = o * jnp.tanh(c_new)
            return (h_new, c_new), h_new

        (h_n, c_n), outs = jax.lax.scan(step, (h0, c0), layer_in)
        h_list.append(h_n)
        c_list.append(c_n)
        layer_in = outs
    return (jnp.transpose(layer_in, (1, 0, 2)),
            (jnp.stack(h_list, 0), jnp.stack(c_list, 0)))


def init_lstm_params(key, input_size, hidden_size, num_layers):
    """Deterministic init mimicking PyTorch LSTM shapes: U(-1/sqrt(H), 1/sqrt(H))."""
    params = []
    bound = 1.0 / jnp.sqrt(jnp.float32(hidden_size))
    for l in range(num_layers):
        in_sz = input_size if l == 0 else hidden_size
        key, k1, k2, k3, k4 = jax.random.split(key, 5)
        w_ih = jax.random.uniform(k1, (4 * hidden_size, in_sz), jnp.float32,
                                  -bound, bound)
        w_hh = jax.random.uniform(k2, (4 * hidden_size, hidden_size), jnp.float32,
                                  -bound, bound)
        b_ih = jax.random.uniform(k3, (4 * hidden_size,), jnp.float32, -bound, bound)
        b_hh = jax.random.uniform(k4, (4 * hidden_size,), jnp.float32, -bound, bound)
        params.append((w_ih, w_hh, b_ih, b_hh))
    return params


if __name__ == "__main__":
    # Small shapes consistent with the module: batch=2, seq=8, input=4, hidden=32, 2 layers.
    B, S, INPUT, HIDDEN, LAYERS = 2, 8, 4, 32, 2

    key = jax.random.PRNGKey(0)
    key, kx = jax.random.split(key)
    x = jax.random.normal(kx, (B, S, INPUT), jnp.float32)
    params = init_lstm_params(key, INPUT, HIDDEN, LAYERS)

    lstm_out, (h_n, c_n) = pointer_encoder_forward(x, params, HIDDEN, LAYERS)
    jax.block_until_ready((lstm_out, h_n, c_n))

    # Sanity check against a pure-JAX reference.
    ref_out, (ref_h, ref_c) = _reference_forward(x, params, HIDDEN, LAYERS)
    assert lstm_out.shape == (B, S, HIDDEN)
    assert h_n.shape == (LAYERS, B, HIDDEN) and c_n.shape == (LAYERS, B, HIDDEN)
    assert jnp.allclose(lstm_out, ref_out, atol=1e-5, rtol=1e-5)
    assert jnp.allclose(h_n, ref_h, atol=1e-5, rtol=1e-5)
    assert jnp.allclose(c_n, ref_c, atol=1e-5, rtol=1e-5)

    print("KERNEL_OK")
</pallas_src>

<mosaic_0001>
module attributes {stable_mosaic.version = 11 : i64} {
  func.func @_fused_lstm_kernel(%arg0: memref<8x2x4xf32, #tpu.memory_space<vmem>>, %arg1: memref<4x128xf32, #tpu.memory_space<vmem>>, %arg2: memref<32x128xf32, #tpu.memory_space<vmem>>, %arg3: memref<1x128xf32, #tpu.memory_space<vmem>>, %arg4: memref<32x128xf32, #tpu.memory_space<vmem>>, %arg5: memref<32x128xf32, #tpu.memory_space<vmem>>, %arg6: memref<1x128xf32, #tpu.memory_space<vmem>>, %arg7: memref<8x2x32xf32, #tpu.memory_space<vmem>>, %arg8: memref<2x2x32xf32, #tpu.memory_space<vmem>>, %arg9: memref<2x2x32xf32, #tpu.memory_space<vmem>>, %arg10: memref<8x2x32xf32, #tpu.memory_space<vmem>>, %arg11: memref<8x2x128xf32, #tpu.memory_space<vmem>>) attributes {dimension_semantics = [], scalar_prefetch = 0 : i64, scratch_operands = 2 : i64, tpu.core_type = #tpu.core_type<tc>} {
    %c0 = arith.constant 0 : index
    %c0_0 = arith.constant 0 : index
    %c0_1 = arith.constant 0 : index
    %0 = vector.load %arg0[%c0, %c0_0, %c0_1] : memref<8x2x4xf32, #tpu.memory_space<vmem>>, vector<8x2x4xf32>
    %1 = vector.shape_cast %0 : vector<8x2x4xf32> to vector<16x4xf32>
    %c0_2 = arith.constant 0 : index
    %c0_3 = arith.constant 0 : index
    %2 = vector.load %arg1[%c0_2, %c0_3] : memref<4x128xf32, #tpu.memory_space<vmem>>, vector<4x128xf32>
    %cst = arith.constant dense<0.000000e+00> : vector<16x128xf32>
    %3 = tpu.matmul %1, %2, %cst {dimension_numbers = #tpu.dot_dimension_numbers<[1], [0], [0], [1], [0, 0, 1, 1], [], []>} : vector<16x4xf32>, vector<4x128xf32>, vector<16x128xf32> -> vector<16x128xf32>
    %c0_4 = arith.constant 0 : index
    %c0_5 = arith.constant 0 : index
    %4 = vector.load %arg3[%c0_4, %c0_5] : memref<1x128xf32, #tpu.memory_space<vmem>>, vector<1x128xf32>
    %5 = vector.broadcast %4 : vector<1x128xf32> to vector<16x128xf32>
    %6 = arith.addf %3, %5 : vector<16x128xf32>
    %7 = vector.shape_cast %6 : vector<16x128xf32> to vector<8x2x128xf32>
    %c0_6 = arith.constant 0 : index
    %c0_7 = arith.constant 0 : index
    %c0_8 = arith.constant 0 : index
    %8 = vector.load %arg11[%c0_6, %c0_7, %c0_8] : memref<8x2x128xf32, #tpu.memory_space<vmem>>, vector<8x2x128xf32>
    tpu.vector_store %arg11[%c0_6, %c0_7, %c0_8], %7 {strides = array<i32>} : memref<8x2x128xf32, #tpu.memory_space<vmem>>, vector<8x2x128xf32>,
    %c0_9 = arith.constant 0 : index
    %c0_10 = arith.constant 0 : index
    %9 = vector.load %arg2[%c0_9, %c0_10] : memref<32x128xf32, #tpu.memory_space<vmem>>, vector<32x128xf32>
    %cst_11 = arith.constant 0.000000e+00 : f32
    %10 = vector.broadcast %cst_11 : f32 to vector<2x32xf32>
    %cst_12 = arith.constant 0.000000e+00 : f32
    %11 = vector.broadcast %cst_12 : f32 to vector<2x32xf32>
    %c0_i32 = arith.constant 0 : i32
    %12 = arith.index_cast %c0_i32 : i32 to index
    %c0_13 = arith.constant 0 : index
    %c0_14 = arith.constant 0 : index
    %13 = vector.load %arg11[%12, %c0_13, %c0_14] : memref<8x2x128xf32, #tpu.memory_space<vmem>>, vector<1x2x128xf32>
    %14 = vector.shape_cast %13 : vector<1x2x128xf32> to vector<2x128xf32>
    %cst_15 = arith.constant dense<0.000000e+00> : vector<2x128xf32>
    %15 = tpu.matmul %10, %9, %cst_15 {dimension_numbers = #tpu.dot_dimension_numbers<[1], [0], [0], [1], [0, 0, 1, 1], [], []>} : vector<2x32xf32>, vector<32x128xf32>, vector<2x128xf32> -> vector<2x128xf32>
    %16 = arith.addf %14, %15 : vector<2x128xf32>
    %17 = vector.extract_strided_slice %16 {offsets = [0, 0], sizes = [2, 32], strides = [1, 1]} : vector<2x128xf32> to vector<2x32xf32>
    %18 = arith.negf %17 : vector<2x32xf32>
    %19 = math.exp %18 : vector<2x32xf32>
    %cst_16 = arith.constant 1.000000e+00 : f32
    %20 = vector.broadcast %cst_16 : f32 to vector<2x32xf32>
    %21 = arith.addf %20, %19 : vector<2x32xf32>
    %22 = arith.divf %20, %21 : vector<2x32xf32>
    %23 = vector.extract_strided_slice %16 {offsets = [0, 32], sizes = [2, 32], strides = [1, 1]} : vector<2x128xf32> to vector<2x32xf32>
    %24 = arith.negf %23 : vector<2x32xf32>
    %25 = math.exp %24 : vector<2x32xf32>
    %cst_17 = arith.constant 1.000000e+00 : f32
    %26 = vector.broadcast %cst_17 : f32 to vector<2x32xf32>
    %27 = arith.addf %26, %25 : vector<2x32xf32>
    %28 = arith.divf %26, %27 : vector<2x32xf32>
    %29 = vector.extract_strided_slice %16 {offsets = [0, 64], sizes = [2, 32], strides = [1, 1]} : vector<2x128xf32> to vector<2x32xf32>
    %30 = math.tanh %29 : vector<2x32xf32>
    %31 = vector.extract_strided_slice %16 {offsets = [0, 96], sizes = [2, 32], strides = [1, 1]} : vector<2x128xf32> to vector<2x32xf32>
    %32 = arith.negf %31 : vector<2x32xf32>
    %33 = math.exp %32 : vector<2x32xf32>
    %cst_18 = arith.constant 1.000000e+00 : f32
    %34 = vector.broadcast %cst_18 : f32 to vector<2x32xf32>
    %35 = arith.addf %34, %33 : vector<2x32xf32>
    %36 = arith.divf %34, %35 : vector<2x32xf32>
    %37 = arith.mulf %28, %11 : vector<2x32xf32>
    %38 = arith.mulf %22, %30 : vector<2x32xf32>
    %39 = arith.addf %37, %38 : vector<2x32xf32>
    %40 = math.tanh %39 : vector<2x32xf32>
    %41 = arith.mulf %36, %40 : vector<2x32xf32>
    %42 = arith.index_cast %c0_i32 : i32 to index
    %c0_19 = arith.constant 0 : index
    %c0_20 = arith.constant 0 : index
    %43 = vector.load %arg10[%42, %c0_19, %c0_20] : memref<8x2x32xf32, #tpu.memory_space<vmem>>, vector<1x2x32xf32>
    %44 = vector.shape_cast %43 : vector<1x2x32xf32> to vector<2x32xf32>
    %45 = vector.shape_cast %41 : vector<2x32xf32> to vector<1x2x32xf32>
    tpu.vector_store %arg10[%42, %c0_19, %c0_20], %45 {strides = array<i32>} : memref<8x2x32xf32, #tpu.memory_space<vmem>>, vector<1x2x32xf32>,
    %c1_i32 = arith.constant 1 : i32
    %46 = arith.index_cast %c1_i32 : i32 to index
    %c0_21 = arith.constant 0 : index
    %c0_22 = arith.constant 0 : index
    %47 = vector.load %arg11[%46, %c0_21, %c0_22] : memref<8x2x128xf32, #tpu.memory_space<vmem>>, vector<1x2x128xf32>
    %48 = vector.shape_cast %47 : vector<1x2x128xf32> to vector<2x128xf32>
    %cst_23 = arith.constant dense<0.000000e+00> : vector<2x128xf32>
    %49 = tpu.matmul %41, %9, %cst_23 {dimension_numbers = #tpu.dot_dimension_numbers<[1], [0], [0], [1], [0, 0, 1, 1], [], []>} : vector<2x32xf32>, vector<32x128xf32>, vector<2x128xf32> -> vector<2x128xf32>
    %50 = arith.addf %48, %49 : vector<2x128xf32>
    %51 = vector.extract_strided_slice %50 {offsets = [0, 0], sizes = [2, 32], strides = [1, 1]} : vector<2x128xf32> to vector<2x32xf32>
    %52 = arith.negf %51 : vector<2x32xf32>
    %53 = math.exp %52 : vector<2x32xf32>
    %cst_24 = arith.constant 1.000000e+00 : f32
    %54 = vector.broadcast %cst_24 : f32 to vector<2x32xf32>
    %55 = arith.addf %54, %53 : vector<2x32xf32>
    %56 = arith.divf %54, %55 : vector<2x32xf32>
    %57 = vector.extract_strided_slice %50 {offsets = [0, 32], sizes = [2, 32], strides = [1, 1]} : vector<2x128xf32> to vector<2x32xf32>
    %58 = arith.negf %57 : vector<2x32xf32>
    %59 = math.exp %58 : vector<2x32xf32>
    %cst_25 = arith.constant 1.000000e+00 : f32
    %60 = vector.broadcast %cst_25 : f32 to vector<2x32xf32>
    %61 = arith.addf %60, %59 : vector<2x32xf32>
    %62 = arith.divf %60, %61 : vector<2x32xf32>
    %63 = vector.extract_strided_slice %50 {offsets = [0, 64], sizes = [2, 32], strides = [1, 1]} : vector<2x128xf32> to vector<2x32xf32>
    %64 = math.tanh %63 : vector<2x32xf32>
    %65 = vector.extract_strided_slice %50 {offsets = [0, 96], sizes = [2, 32], strides = [1, 1]} : vector<2x128xf32> to vector<2x32xf32>
    %66 = arith.negf %65 : vector<2x32xf32>
    %67 = math.exp %66 : vector<2x32xf32>
    %cst_26 = arith.constant 1.000000e+00 : f32
    %68 = vector.broadcast %cst_26 : f32 to vector<2x32xf32>
    %69 = arith.addf %68, %67 : vector<2x32xf32>
    %70 = arith.divf %68, %69 : vector<2x32xf32>
    %71 = arith.mulf %62, %39 : vector<2x32xf32>
    %72 = arith.mulf %56, %64 : vector<2x32xf32>
    %73 = arith.addf %71, %72 : vector<2x32xf32>
    %74 = math.tanh %73 : vector<2x32xf32>
    %75 = arith.mulf %70, %74 : vector<2x32xf32>
    %76 = arith.index_cast %c1_i32 : i32 to index
    %c0_27 = arith.constant 0 : index
    %c0_28 = arith.constant 0 : index
    %77 = vector.load %arg10[%76, %c0_27, %c0_28] : memref<8x2x32xf32, #tpu.memory_space<vmem>>, vector<1x2x32xf32>
    %78 = vector.shape_cast %77 : vector<1x2x32xf32> to vector<2x32xf32>
    %79 = vector.shape_cast %75 : vector<2x32xf32> to vector<1x2x32xf32>
    tpu.vector_store %arg10[%76, %c0_27, %c0_28], %79 {strides = array<i32>} : memref<8x2x32xf32, #tpu.memory_space<vmem>>, vector<1x2x32xf32>,
    %c2_i32 = arith.constant 2 : i32
    %80 = arith.index_cast %c2_i32 : i32 to index
    %c0_29 = arith.constant 0 : index
    %c0_30 = arith.constant 0 : index
    %81 = vector.load %arg11[%80, %c0_29, %c0_30] : memref<8x2x128xf32, #tpu.memory_space<vmem>>, vector<1x2x128xf32>
    %82 = vector.shape_cast %81 : vector<1x2x128xf32> to vector<2x128xf32>
    %cst_31 = arith.constant dense<0.000000e+00> : vector<2x128xf32>
    %83 = tpu.matmul %75, %9, %cst_31 {dimension_numbers = #tpu.dot_dimension_numbers<[1], [0], [0], [1], [0, 0, 1, 1], [], []>} : vector<2x32xf32>, vector<32x128xf32>, vector<2x128xf32> -> vector<2x128xf32>
    %84 = arith.addf %82, %83 : vector<2x128xf32>
    %85 = vector.extract_strided_slice %84 {offsets = [0, 0], sizes = [2, 32], strides = [1, 1]} : vector<2x128xf32> to vector<2x32xf32>
    %86 = arith.negf %85 : vector<2x32xf32>
    %87 = math.exp %86 : vector<2x32xf32>
    %cst_32 = arith.constant 1.000000e+00 : f32
    %88 = vector.broadcast %cst_32 : f32 to vector<2x32xf32>
    %89 = arith.addf %88, %87 : vector<2x32xf32>
    %90 = arith.divf %88, %89 : vector<2x32xf32>
    %91 = vector.extract_strided_slice %84 {offsets = [0, 32], sizes = [2, 32], strides = [1, 1]} : vector<2x128xf32> to vector<2x32xf32>
    %92 = arith.negf %91 : vector<2x32xf32>
    %93 = math.exp %92 : vector<2x32xf32>
    %cst_33 = arith.constant 1.000000e+00 : f32
    %94 = vector.broadcast %cst_33 : f32 to vector<2x32xf32>
    %95 = arith.addf %94, %93 : vector<2x32xf32>
    %96 = arith.divf %94, %95 : vector<2x32xf32>
    %97 = vector.extract_strided_slice %84 {offsets = [0, 64], sizes = [2, 32], strides = [1, 1]} : vector<2x128xf32> to vector<2x32xf32>
    %98 = math.tanh %97 : vector<2x32xf32>
    %99 = vector.extract_strided_slice %84 {offsets = [0, 96], sizes = [2, 32], strides = [1, 1]} : vector<2x128xf32> to vector<2x32xf32>
    %100 = arith.negf %99 : vector<2x32xf32>
    %101 = math.exp %100 : vector<2x32xf32>
    %cst_34 = arith.constant 1.000000e+00 : f32
    %102 = vector.broadcast %cst_34 : f32 to vector<2x32xf32>
    %103 = arith.addf %102, %101 : vector<2x32xf32>
    %104 = arith.divf %102, %103 : vector<2x32xf32>
    %105 = arith.mulf %96, %73 : vector<2x32xf32>
    %106 = arith.mulf %90, %98 : vector<2x32xf32>
    %107 = arith.addf %105, %106 : vector<2x32xf32>
    %108 = math.tanh %107 : vector<2x32xf32>
    %109 = arith.mulf %104, %108 : vector<2x32xf32>
    %110 = arith.index_cast %c2_i32 : i32 to index
    %c0_35 = arith.constant 0 : index
    %c0_36 = arith.constant 0 : index
    %111 = vector.load %arg10[%110, %c0_35, %c0_36] : memref<8x2x32xf32, #tpu.memory_space<vmem>>, vector<1x2x32xf32>
    %112 = vector.shape_cast %111 : vector<1x2x32xf32> to vector<2x32xf32>
    %113 = vector.shape_cast %109 : vector<2x32xf32> to vector<1x2x32xf32>
    tpu.vector_store %arg10[%110, %c0_35, %c0_36], %113 {strides = array<i32>} : memref<8x2x32xf32, #tpu.memory_space<vmem>>, vector<1x2x32xf32>,
    %c3_i32 = arith.constant 3 : i32
    %114 = arith.index_cast %c3_i32 : i32 to index
    %c0_37 = arith.constant 0 : index
    %c0_38 = arith.constant 0 : index
    %115 = vector.load %arg11[%114, %c0_37, %c0_38] : memref<8x2x128xf32, #tpu.memory_space<vmem>>, vector<1x2x128xf32>
    %116 = vector.shape_cast %115 : vector<1x2x128xf32> to vector<2x128xf32>
    %cst_39 = arith.constant dense<0.000000e+00> : vector<2x128xf32>
    %117 = tpu.matmul %109, %9, %cst_39 {dimension_numbers = #tpu.dot_dimension_numbers<[1], [0], [0], [1], [0, 0, 1, 1], [], []>} : vector<2x32xf32>, vector<32x128xf32>, vector<2x128xf32> -> vector<2x128xf32>
    %118 = arith.addf %116, %117 : vector<2x128xf32>
    %119 = vector.extract_strided_slice %118 {offsets = [0, 0], sizes = [2, 32], strides = [1, 1]} : vector<2x128xf32> to vector<2x32xf32>
    %120 = arith.negf %119 : vector<2x32xf32>
    %121 = math.exp %120 : vector<2x32xf32>
    %cst_40 = arith.constant 1.000000e+00 : f32
    %122 = vector.broadcast %cst_40 : f32 to vector<2x32xf32>
    %123 = arith.addf %122, %121 : vector<2x32xf32>
    %124 = arith.divf %122, %123 : vector<2x32xf32>
    %125 = vector.extract_strided_slice %118 {offsets = [0, 32], sizes = [2, 32], strides = [1, 1]} : vector<2x128xf32> to vector<2x32xf32>
    %126 = arith.negf %125 : vector<2x32xf32>
    %127 = math.exp %126 : vector<2x32xf32>
    %cst_41 = arith.constant 1.000000e+00 : f32
    %128 = vector.broadcast %cst_41 : f32 to vector<2x32xf32>
    %129 = arith.addf %128, %127 : vector<2x32xf32>
    %130 = arith.divf %128, %129 : vector<2x32xf32>
    %131 = vector.extract_strided_slice %118 {offsets = [0, 64], sizes = [2, 32], strides = [1, 1]} : vector<2x128xf32> to vector<2x32xf32>
    %132 = math.tanh %131 : vector<2x32xf32>
    %133 = vector.extract_strided_slice %118 {offsets = [0, 96], sizes = [2, 32], strides = [1, 1]} : vector<2x128xf32> to vector<2x32xf32>
    %134 = arith.negf %133 : vector<2x32xf32>
    %135 = math.exp %134 : vector<2x32xf32>
    %cst_42 = arith.constant 1.000000e+00 : f32
    %136 = vector.broadcast %cst_42 : f32 to vector<2x32xf32>
    %137 = arith.addf %136, %135 : vector<2x32xf32>
    %138 = arith.divf %136, %137 : vector<2x32xf32>
    %139 = arith.mulf %130, %107 : vector<2x32xf32>
    %140 = arith.mulf %124, %132 : vector<2x32xf32>
    %141 = arith.addf %139, %140 : vector<2x32xf32>
    %142 = math.tanh %141 : vector<2x32xf32>
    %143 = arith.mulf %138, %142 : vector<2x32xf32>
    %144 = arith.index_cast %c3_i32 : i32 to index
    %c0_43 = arith.constant 0 : index
    %c0_44 = arith.constant 0 : index
    %145 = vector.load %arg10[%144, %c0_43, %c0_44] : memref<8x2x32xf32, #tpu.memory_space<vmem>>, vector<1x2x32xf32>
    %146 = vector.shape_cast %145 : vector<1x2x32xf32> to vector<2x32xf32>
    %147 = vector.shape_cast %143 : vector<2x32xf32> to vector<1x2x32xf32>
    tpu.vector_store %arg10[%144, %c0_43, %c0_44], %147 {strides = array<i32>} : memref<8x2x32xf32, #tpu.memory_space<vmem>>, vector<1x2x32xf32>,
    %c4_i32 = arith.constant 4 : i32
    %148 = arith.index_cast %c4_i32 : i32 to index
    %c0_45 = arith.constant 0 : index
    %c0_46 = arith.constant 0 : index
    %149 = vector.load %arg11[%148, %c0_45, %c0_46] : memref<8x2x128xf32, #tpu.memory_space<vmem>>, vector<1x2x128xf32>
    %150 = vector.shape_cast %149 : vector<1x2x128xf32> to vector<2x128xf32>
    %cst_47 = arith.constant dense<0.000000e+00> : vector<2x128xf32>
    %151 = tpu.matmul %143, %9, %cst_47 {dimension_numbers = #tpu.dot_dimension_numbers<[1], [0], [0], [1], [0, 0, 1, 1], [], []>} : vector<2x32xf32>, vector<32x128xf32>, vector<2x128xf32> -> vector<2x128xf32>
    %152 = arith.addf %150, %151 : vector<2x128xf32>
    %153 = vector.extract_strided_slice %152 {offsets = [0, 0], sizes = [2, 32], strides = [1, 1]} : vector<2x128xf32> to vector<2x32xf32>
    %154 = arith.negf %153 : vector<2x32xf32>
    %155 = math.exp %154 : vector<2x32xf32>
    %cst_48 = arith.constant 1.000000e+00 : f32
    %156 = vector.broadcast %cst_48 : f32 to vector<2x32xf32>
    %157 = arith.addf %156, %155 : vector<2x32xf32>
    %158 = arith.divf %156, %157 : vector<2x32xf32>
    %159 = vector.extract_strided_slice %152 {offsets = [0, 32], sizes = [2, 32], strides = [1, 1]} : vector<2x128xf32> to vector<2x32xf32>
    %160 = arith.negf %159 : vector<2x32xf32>
    %161 = math.exp %160 : vector<2x32xf32>
    %cst_49 = arith.constant 1.000000e+00 : f32
    %162 = vector.broadcast %cst_49 : f32 to vector<2x32xf32>
    %163 = arith.addf %162, %161 : vector<2x32xf32>
    %164 = arith.divf %162, %163 : vector<2x32xf32>
    %165 = vector.extract_strided_slice %152 {offsets = [0, 64], sizes = [2, 32], strides = [1, 1]} : vector<2x128xf32> to vector<2x32xf32>
    %166 = math.tanh %165 : vector<2x32xf32>
    %167 = vector.extract_strided_slice %152 {offsets = [0, 96], sizes = [2, 32], strides = [1, 1]} : vector<2x128xf32> to vector<2x32xf32>
    %168 = arith.negf %167 : vector<2x32xf32>
    %169 = math.exp %168 : vector<2x32xf32>
    %cst_50 = arith.constant 1.000000e+00 : f32
    %170 = vector.broadcast %cst_50 : f32 to vector<2x32xf32>
    %171 = arith.addf %170, %169 : vector<2x32xf32>
    %172 = arith.divf %170, %171 : vector<2x32xf32>
    %173 = arith.mulf %164, %141 : vector<2x32xf32>
    %174 = arith.mulf %158, %166 : vector<2x32xf32>
    %175 = arith.addf %173, %174 : vector<2x32xf32>
    %176 = math.tanh %175 : vector<2x32xf32>
    %177 = arith.mulf %172, %176 : vector<2x32xf32>
    %178 = arith.index_cast %c4_i32 : i32 to index
    %c0_51 = arith.constant 0 : index
    %c0_52 = arith.constant 0 : index
    %179 = vector.load %arg10[%178, %c0_51, %c0_52] : memref<8x2x32xf32, #tpu.memory_space<vmem>>, vector<1x2x32xf32>
    %180 = vector.shape_cast %179 : vector<1x2x32xf32> to vector<2x32xf32>
    %181 = vector.shape_cast %177 : vector<2x32xf32> to vector<1x2x32xf32>
    tpu.vector_store %arg10[%178, %c0_51, %c0_52], %181 {strides = array<i32>} : memref<8x2x32xf32, #tpu.memory_space<vmem>>, vector<1x2x32xf32>,
    %c5_i32 = arith.constant 5 : i32
    %182 = arith.index_cast %c5_i32 : i32 to index
    %c0_53 = arith.constant 0 : index
    %c0_54 = arith.constant 0 : index
    %183 = vector.load %arg11[%182, %c0_53, %c0_54] : memref<8x2x128xf32, #tpu.memory_space<vmem>>, vector<1x2x128xf32>
    %184 = vector.shape_cast %183 : vector<1x2x128xf32> to vector<2x128xf32>
    %cst_55 = arith.constant dense<0.000000e+00> : vector<2x128xf32>
    %185 = tpu.matmul %177, %9, %cst_55 {dimension_numbers = #tpu.dot_dimension_numbers<[1], [0], [0], [1], [0, 0, 1, 1], [], []>} : vector<2x32xf32>, vector<32x128xf32>, vector<2x128xf32> -> vector<2x128xf32>
    %186 = arith.addf %184, %185 : vector<2x128xf32>
    %187 = vector.extract_strided_slice %186 {offsets = [0, 0], sizes = [2, 32], strides = [1, 1]} : vector<2x128xf32> to vector<2x32xf32>
    %188 = arith.negf %187 : vector<2x32xf32>
    %189 = math.exp %188 : vector<2x32xf32>
    %cst_56 = arith.constant 1.000000e+00 : f32
    %190 = vector.broadcast %cst_56 : f32 to vector<2x32xf32>
    %191 = arith.addf %190, %189 : vector<2x32xf32>
    %192 = arith.divf %190, %191 : vector<2x32xf32>
    %193 = vector.extract_strided_slice %186 {offsets = [0, 32], sizes = [2, 32], strides = [1, 1]} : vector<2x128xf32> to vector<2x32xf32>
    %194 = arith.negf %193 : vector<2x32xf32>
    %195 = math.exp %194 : vector<2x32xf32>
    %cst_57 = arith.constant 1.000000e+00 : f32
    %196 = vector.broadcast %cst_57 : f32 to vector<2x32xf32>
    %197 = arith.addf %196, %195 : vector<2x32xf32>
    %198 = arith.divf %196, %197 : vector<2x32xf32>
    %199 = vector.extract_strided_slice %186 {offsets = [0, 64], sizes = [2, 32], strides = [1, 1]} : vector<2x128xf32> to vector<2x32xf32>
    %200 = math.tanh %199 : vector<2x32xf32>
    %201 = vector.extract_strided_slice %186 {offsets = [0, 96], sizes = [2, 32], strides = [1, 1]} : vector<2x128xf32> to vector<2x32xf32>
    %202 = arith.negf %201 : vector<2x32xf32>
    %203 = math.exp %202 : vector<2x32xf32>
    %cst_58 = arith.constant 1.000000e+00 : f32
    %204 = vector.broadcast %cst_58 : f32 to vector<2x32xf32>
    %205 = arith.addf %204, %203 : vector<2x32xf32>
    %206 = arith.divf %204, %205 : vector<2x32xf32>
    %207 = arith.mulf %198, %175 : vector<2x32xf32>
    %208 = arith.mulf %192, %200 : vector<2x32xf32>
    %209 = arith.addf %207, %208 : vector<2x32xf32>
    %210 = math.tanh %209 : vector<2x32xf32>
    %211 = arith.mulf %206, %210 : vector<2x32xf32>
    %212 = arith.index_cast %c5_i32 : i32 to index
    %c0_59 = arith.constant 0 : index
    %c0_60 = arith.constant 0 : index
    %213 = vector.load %arg10[%212, %c0_59, %c0_60] : memref<8x2x32xf32, #tpu.memory_space<vmem>>, vector<1x2x32xf32>
    %214 = vector.shape_cast %213 : vector<1x2x32xf32> to vector<2x32xf32>
    %215 = vector.shape_cast %211 : vector<2x32xf32> to vector<1x2x32xf32>
    tpu.vector_store %arg10[%212, %c0_59, %c0_60], %215 {strides = array<i32>} : memref<8x2x32xf32, #tpu.memory_space<vmem>>, vector<1x2x32xf32>,
    %c6_i32 = arith.constant 6 : i32
    %216 = arith.index_cast %c6_i32 : i32 to index
    %c0_61 = arith.constant 0 : index
    %c0_62 = arith.constant 0 : index
    %217 = vector.load %arg11[%216, %c0_61, %c0_62] : memref<8x2x128xf32, #tpu.memory_space<vmem>>, vector<1x2x128xf32>
    %218 = vector.shape_cast %217 : vector<1x2x128xf32> to vector<2x128xf32>
    %cst_63 = arith.constant dense<0.000000e+00> : vector<2x128xf32>
    %219 = tpu.matmul %211, %9, %cst_63 {dimension_numbers = #tpu.dot_dimension_numbers<[1], [0], [0], [1], [0, 0, 1, 1], [], []>} : vector<2x32xf32>, vector<32x128xf32>, vector<2x128xf32> -> vector<2x128xf32>
    %220 = arith.addf %218, %219 : vector<2x128xf32>
    %221 = vector.extract_strided_slice %220 {offsets = [0, 0], sizes = [2, 32], strides = [1, 1]} : vector<2x128xf32> to vector<2x32xf32>
    %222 = arith.negf %221 : vector<2x32xf32>
    %223 = math.exp %222 : vector<2x32xf32>
    %cst_64 = arith.constant 1.000000e+00 : f32
    %224 = vector.broadcast %cst_64 : f32 to vector<2x32xf32>
    %225 = arith.addf %224, %223 : vector<2x32xf32>
    %226 = arith.divf %224, %225 : vector<2x32xf32>
    %227 = vector.extract_strided_slice %220 {offsets = [0, 32], sizes = [2, 32], strides = [1, 1]} : vector<2x128xf32> to vector<2x32xf32>
    %228 = arith.negf %227 : vector<2x32xf32>
    %229 = math.exp %228 : vector<2x32xf32>
    %cst_65 = arith.constant 1.000000e+00 : f32
    %230 = vector.broadcast %cst_65 : f32 to vector<2x32xf32>
    %231 = arith.addf %230, %229 : vector<2x32xf32>
    %232 = arith.divf %230, %231 : vector<2x32xf32>
    %233 = vector.extract_strided_slice %220 {offsets = [0, 64], sizes = [2, 32], strides = [1, 1]} : vector<2x128xf32> to vector<2x32xf32>
    %234 = math.tanh %233 : vector<2x32xf32>
    %235 = vector.extract_strided_slice %220 {offsets = [0, 96], sizes = [2, 32], strides = [1, 1]} : vector<2x128xf32> to vector<2x32xf32>
    %236 = arith.negf %235 : vector<2x32xf32>
    %237 = math.exp %236 : vector<2x32xf32>
    %cst_66 = arith.constant 1.000000e+00 : f32
    %238 = vector.broadcast %cst_66 : f32 to vector<2x32xf32>
    %239 = arith.addf %238, %237 : vector<2x32xf32>
    %240 = arith.divf %238, %239 : vector<2x32xf32>
    %241 = arith.mulf %232, %209 : vector<2x32xf32>
    %242 = arith.mulf %226, %234 : vector<2x32xf32>
    %243 = arith.addf %241, %242 : vector<2x32xf32>
    %244 = math.tanh %243 : vector<2x32xf32>
    %245 = arith.mulf %240, %244 : vector<2x32xf32>
    %246 = arith.index_cast %c6_i32 : i32 to index
    %c0_67 = arith.constant 0 : index
    %c0_68 = arith.constant 0 : index
    %247 = vector.load %arg10[%246, %c0_67, %c0_68] : memref<8x2x32xf32, #tpu.memory_space<vmem>>, vector<1x2x32xf32>
    %248 = vector.shape_cast %247 : vector<1x2x32xf32> to vector<2x32xf32>
    %249 = vector.shape_cast %245 : vector<2x32xf32> to vector<1x2x32xf32>
    tpu.vector_store %arg10[%246, %c0_67, %c0_68], %249 {strides = array<i32>} : memref<8x2x32xf32, #tpu.memory_space<vmem>>, vector<1x2x32xf32>,
    %c7_i32 = arith.constant 7 : i32
    %250 = arith.index_cast %c7_i32 : i32 to index
    %c0_69 = arith.constant 0 : index
    %c0_70 = arith.constant 0 : index
    %251 = vector.load %arg11[%250, %c0_69, %c0_70] : memref<8x2x128xf32, #tpu.memory_space<vmem>>, vector<1x2x128xf32>
    %252 = vector.shape_cast %251 : vector<1x2x128xf32> to vector<2x128xf32>
    %cst_71 = arith.constant dense<0.000000e+00> : vector<2x128xf32>
    %253 = tpu.matmul %245, %9, %cst_71 {dimension_numbers = #tpu.dot_dimension_numbers<[1], [0], [0], [1], [0, 0, 1, 1], [], []>} : vector<2x32xf32>, vector<32x128xf32>, vector<2x128xf32> -> vector<2x128xf32>
    %254 = arith.addf %252, %253 : vector<2x128xf32>
    %255 = vector.extract_strided_slice %254 {offsets = [0, 0], sizes = [2, 32], strides = [1, 1]} : vector<2x128xf32> to vector<2x32xf32>
    %256 = arith.negf %255 : vector<2x32xf32>
    %257 = math.exp %256 : vector<2x32xf32>
    %cst_72 = arith.constant 1.000000e+00 : f32
    %258 = vector.broadcast %cst_72 : f32 to vector<2x32xf32>
    %259 = arith.addf %258, %257 : vector<2x32xf32>
    %260 = arith.divf %258, %259 : vector<2x32xf32>
    %261 = vector.extract_strided_slice %254 {offsets = [0, 32], sizes = [2, 32], strides = [1, 1]} : vector<2x128xf32> to vector<2x32xf32>
    %262 = arith.negf %261 : vector<2x32xf32>
    %263 = math.exp %262 : vector<2x32xf32>
    %cst_73 = arith.constant 1.000000e+00 : f32
    %264 = vector.broadcast %cst_73 : f32 to vector<2x32xf32>
    %265 = arith.addf %264, %263 : vector<2x32xf32>
    %266 = arith.divf %264, %265 : vector<2x32xf32>
    %267 = vector.extract_strided_slice %254 {offsets = [0, 64], sizes = [2, 32], strides = [1, 1]} : vector<2x128xf32> to vector<2x32xf32>
    %268 = math.tanh %267 : vector<2x32xf32>
    %269 = vector.extract_strided_slice %254 {offsets = [0, 96], sizes = [2, 32], strides = [1, 1]} : vector<2x128xf32> to vector<2x32xf32>
    %270 = arith.negf %269 : vector<2x32xf32>
    %271 = math.exp %270 : vector<2x32xf32>
    %cst_74 = arith.constant 1.000000e+00 : f32
    %272 = vector.broadcast %cst_74 : f32 to vector<2x32xf32>
    %273 = arith.addf %272, %271 : vector<2x32xf32>
    %274 = arith.divf %272, %273 : vector<2x32xf32>
    %275 = arith.mulf %266, %243 : vector<2x32xf32>
    %276 = arith.mulf %260, %268 : vector<2x32xf32>
    %277 = arith.addf %275, %276 : vector<2x32xf32>
    %278 = math.tanh %277 : vector<2x32xf32>
    %279 = arith.mulf %274, %278 : vector<2x32xf32>
    %280 = arith.index_cast %c7_i32 : i32 to index
    %c0_75 = arith.constant 0 : index
    %c0_76 = arith.constant 0 : index
    %281 = vector.load %arg10[%280, %c0_75, %c0_76] : memref<8x2x32xf32, #tpu.memory_space<vmem>>, vector<1x2x32xf32>
    %282 = vector.shape_cast %281 : vector<1x2x32xf32> to vector<2x32xf32>
    %283 = vector.shape_cast %279 : vector<2x32xf32> to vector<1x2x32xf32>
    tpu.vector_store %arg10[%280, %c0_75, %c0_76], %283 {strides = array<i32>} : memref<8x2x32xf32, #tpu.memory_space<vmem>>, vector<1x2x32xf32>,
    %c8_i32 = arith.constant 8 : i32
    %c0_77 = arith.constant 0 : index
    %c0_78 = arith.constant 0 : index
    %c0_79 = arith.constant 0 : index
    %284 = vector.load %arg8[%c0_77, %c0_78, %c0_79] : memref<2x2x32xf32, #tpu.memory_space<vmem>>, vector<1x2x32xf32>
    %285 = vector.shape_cast %284 : vector<1x2x32xf32> to vector<2x32xf32>
    %286 = vector.shape_cast %279 : vector<2x32xf32> to vector<1x2x32xf32>
    tpu.vector_store %arg8[%c0_77, %c0_78, %c0_79], %286 {strides = array<i32>} : memref<2x2x32xf32, #tpu.memory_space<vmem>>, vector<1x2x32xf32>,
    %c0_80 = arith.constant 0 : index
    %c0_81 = arith.constant 0 : index
    %c0_82 = arith.constant 0 : index
    %287 = vector.load %arg9[%c0_80, %c0_81, %c0_82] : memref<2x2x32xf32, #tpu.memory_space<vmem>>, vector<1x2x32xf32>
    %288 = vector.shape_cast %287 : vector<1x2x32xf32> to vector<2x32xf32>
    %289 = vector.shape_cast %277 : vector<2x32xf32> to vector<1x2x32xf32>
    tpu.vector_store %arg9[%c0_80, %c0_81, %c0_82], %289 {strides = array<i32>} : memref<2x2x32xf32, #tpu.memory_space<vmem>>, vector<1x2x32xf32>,
    %c0_83 = arith.constant 0 : index
    %c0_84 = arith.constant 0 : index
    %c0_85 = arith.constant 0 : index
    %290 = vector.load %arg10[%c0_83, %c0_84, %c0_85] : memref<8x2x32xf32, #tpu.memory_space<vmem>>, vector<8x2x32xf32>
    %291 = vector.shape_cast %290 : vector<8x2x32xf32> to vector<16x32xf32>
    %c0_86 = arith.constant 0 : index
    %c0_87 = arith.constant 0 : index
    %292 = vector.load %arg4[%c0_86, %c0_87] : memref<32x128xf32, #tpu.memory_space<vmem>>, vector<32x128xf32>
    %cst_88 = arith.constant dense<0.000000e+00> : vector<16x128xf32>
    %293 = tpu.matmul %291, %292, %cst_88 {dimension_numbers = #tpu.dot_dimension_numbers<[1], [0], [0], [1], [0, 0, 1, 1], [], []>} : vector<16x32xf32>, vector<32x128xf32>, vector<16x128xf32> -> vector<16x128xf32>
    %c0_89 = arith.constant 0 : index
    %c0_90 = arith.constant 0 : index
    %294 = vector.load %arg6[%c0_89, %c0_90] : memref<1x128xf32, #tpu.memory_space<vmem>>, vector<1x128xf32>
    %295 = vector.broadcast %294 : vector<1x128xf32> to vector<16x128xf32>
    %296 = arith.addf %293, %295 : vector<16x128xf32>
    %297 = vector.shape_cast %296 : vector<16x128xf32> to vector<8x2x128xf32>
    %c0_91 = arith.constant 0 : index
    %c0_92 = arith.constant 0 : index
    %c0_93 = arith.constant 0 : index
    %298 = vector.load %arg11[%c0_91, %c0_92, %c0_93] : memref<8x2x128xf32, #tpu.memory_space<vmem>>, vector<8x2x128xf32>
    tpu.vector_store %arg11[%c0_91, %c0_92, %c0_93], %297 {strides = array<i32>} : memref<8x2x128xf32, #tpu.memory_space<vmem>>, vector<8x2x128xf32>,
    %c0_94 = arith.constant 0 : index
    %c0_95 = arith.constant 0 : index
    %299 = vector.load %arg5[%c0_94, %c0_95] : memref<32x128xf32, #tpu.memory_space<vmem>>, vector<32x128xf32>
    %cst_96 = arith.constant 0.000000e+00 : f32
    %300 = vector.broadcast %cst_96 : f32 to vector<2x32xf32>
    %cst_97 = arith.constant 0.000000e+00 : f32
    %301 = vector.broadcast %cst_97 : f32 to vector<2x32xf32>
    %c0_i32_98 = arith.constant 0 : i32
    %302 = arith.index_cast %c0_i32_98 : i32 to index
    %c0_99 = arith.constant 0 : index
    %c0_100 = arith.constant 0 : index
    %303 = vector.load %arg11[%302, %c0_99, %c0_100] : memref<8x2x128xf32, #tpu.memory_space<vmem>>, vector<1x2x128xf32>
    %304 = vector.shape_cast %303 : vector<1x2x128xf32> to vector<2x128xf32>
    %cst_101 = arith.constant dense<0.000000e+00> : vector<2x128xf32>
    %305 = tpu.matmul %300, %299, %cst_101 {dimension_numbers = #tpu.dot_dimension_numbers<[1], [0], [0], [1], [0, 0, 1, 1], [], []>} : vector<2x32xf32>, vector<32x128xf32>, vector<2x128xf32> -> vector<2x128xf32>
    %306 = arith.addf %304, %305 : vector<2x128xf32>
    %307 = vector.extract_strided_slice %306 {offsets = [0, 0], sizes = [2, 32], strides = [1, 1]} : vector<2x128xf32> to vector<2x32xf32>
    %308 = arith.negf %307 : vector<2x32xf32>
    %309 = math.exp %308 : vector<2x32xf32>
    %cst_102 = arith.constant 1.000000e+00 : f32
    %310 = vector.broadcast %cst_102 : f32 to vector<2x32xf32>
    %311 = arith.addf %310, %309 : vector<2x32xf32>
    %312 = arith.divf %310, %311 : vector<2x32xf32>
    %313 = vector.extract_strided_slice %306 {offsets = [0, 32], sizes = [2, 32], strides = [1, 1]} : vector<2x128xf32> to vector<2x32xf32>
    %314 = arith.negf %313 : vector<2x32xf32>
    %315 = math.exp %314 : vector<2x32xf32>
    %cst_103 = arith.constant 1.000000e+00 : f32
    %316 = vector.broadcast %cst_103 : f32 to vector<2x32xf32>
    %317 = arith.addf %316, %315 : vector<2x32xf32>
    %318 = arith.divf %316, %317 : vector<2x32xf32>
    %319 = vector.extract_strided_slice %306 {offsets = [0, 64], sizes = [2, 32], strides = [1, 1]} : vector<2x128xf32> to vector<2x32xf32>
    %320 = math.tanh %319 : vector<2x32xf32>
    %321 = vector.extract_strided_slice %306 {offsets = [0, 96], sizes = [2, 32], strides = [1, 1]} : vector<2x128xf32> to vector<2x32xf32>
    %322 = arith.negf %321 : vector<2x32xf32>
    %323 = math.exp %322 : vector<2x32xf32>
    %cst_104 = arith.constant 1.000000e+00 : f32
    %324 = vector.broadcast %cst_104 : f32 to vector<2x32xf32>
    %325 = arith.addf %324, %323 : vector<2x32xf32>
    %326 = arith.divf %324, %325 : vector<2x32xf32>
    %327 = arith.mulf %318, %301 : vector<2x32xf32>
    %328 = arith.mulf %312, %320 : vector<2x32xf32>
    %329 = arith.addf %327, %328 : vector<2x32xf32>
    %330 = math.tanh %329 : vector<2x32xf32>
    %331 = arith.mulf %326, %330 : vector<2x32xf32>
    %332 = arith.index_cast %c0_i32_98 : i32 to index
    %c0_105 = arith.constant 0 : index
    %c0_106 = arith.constant 0 : index
    %333 = vector.load %arg7[%332, %c0_105, %c0_106] : memref<8x2x32xf32, #tpu.memory_space<vmem>>, vector<1x2x32xf32>
    %334 = vector.shape_cast %333 : vector<1x2x32xf32> to vector<2x32xf32>
    %335 = vector.shape_cast %331 : vector<2x32xf32> to vector<1x2x32xf32>
    tpu.vector_store %arg7[%332, %c0_105, %c0_106], %335 {strides = array<i32>} : memref<8x2x32xf32, #tpu.memory_space<vmem>>, vector<1x2x32xf32>,
    %c1_i32_107 = arith.constant 1 : i32
    %336 = arith.index_cast %c1_i32_107 : i32 to index
    %c0_108 = arith.constant 0 : index
    %c0_109 = arith.constant 0 : index
    %337 = vector.load %arg11[%336, %c0_108, %c0_109] : memref<8x2x128xf32, #tpu.memory_space<vmem>>, vector<1x2x128xf32>
    %338 = vector.shape_cast %337 : vector<1x2x128xf32> to vector<2x128xf32>
    %cst_110 = arith.constant dense<0.000000e+00> : vector<2x128xf32>
    %339 = tpu.matmul %331, %299, %cst_110 {dimension_numbers = #tpu.dot_dimension_numbers<[1], [0], [0], [1], [0, 0, 1, 1], [], []>} : vector<2x32xf32>, vector<32x128xf32>, vector<2x128xf32> -> vector<2x128xf32>
    %340 = arith.addf %338, %339 : vector<2x128xf32>
    %341 = vector.extract_strided_slice %340 {offsets = [0, 0], sizes = [2, 32], strides = [1, 1]} : vector<2x128xf32> to vector<2x32xf32>
    %342 = arith.negf %341 : vector<2x32xf32>
    %343 = math.exp %342 : vector<2x32xf32>
    %cst_111 = arith.constant 1.000000e+00 : f32
    %344 = vector.broadcast %cst_111 : f32 to vector<2x32xf32>
    %345 = arith.addf %344, %343 : vector<2x32xf32>
    %346 = arith.divf %344, %345 : vector<2x32xf32>
    %347 = vector.extract_strided_slice %340 {offsets = [0, 32], sizes = [2, 32], strides = [1, 1]} : vector<2x128xf32> to vector<2x32xf32>
    %348 = arith.negf %347 : vector<2x32xf32>
    %349 = math.exp %348 : vector<2x32xf32>
    %cst_112 = arith.constant 1.000000e+00 : f32
    %350 = vector.broadcast %cst_112 : f32 to vector<2x32xf32>
    %351 = arith.addf %350, %349 : vector<2x32xf32>
    %352 = arith.divf %350, %351 : vector<2x32xf32>
    %353 = vector.extract_strided_slice %340 {offsets = [0, 64], sizes = [2, 32], strides = [1, 1]} : vector<2x128xf32> to vector<2x32xf32>
    %354 = math.tanh %353 : vector<2x32xf32>
    %355 = vector.extract_strided_slice %340 {offsets = [0, 96], sizes = [2, 32], strides = [1, 1]} : vector<2x128xf32> to vector<2x32xf32>
    %356 = arith.negf %355 : vector<2x32xf32>
    %357 = math.exp %356 : vector<2x32xf32>
    %cst_113 = arith.constant 1.000000e+00 : f32
    %358 = vector.broadcast %cst_113 : f32 to vector<2x32xf32>
    %359 = arith.addf %358, %357 : vector<2x32xf32>
    %360 = arith.divf %358, %359 : vector<2x32xf32>
    %361 = arith.mulf %352, %329 : vector<2x32xf32>
    %362 = arith.mulf %346, %354 : vector<2x32xf32>
    %363 = arith.addf %361, %362 : vector<2x32xf32>
    %364 = math.tanh %363 : vector<2x32xf32>
    %365 = arith.mulf %360, %364 : vector<2x32xf32>
    %366 = arith.index_cast %c1_i32_107 : i32 to index
    %c0_114 = arith.constant 0 : index
    %c0_115 = arith.constant 0 : index
    %367 = vector.load %arg7[%366, %c0_114, %c0_115] : memref<8x2x32xf32, #tpu.memory_space<vmem>>, vector<1x2x32xf32>
    %368 = vector.shape_cast %367 : vector<1x2x32xf32> to vector<2x32xf32>
    %369 = vector.shape_cast %365 : vector<2x32xf32> to vector<1x2x32xf32>
    tpu.vector_store %arg7[%366, %c0_114, %c0_115], %369 {strides = array<i32>} : memref<8x2x32xf32, #tpu.memory_space<vmem>>, vector<1x2x32xf32>,
    %c2_i32_116 = arith.constant 2 : i32
    %370 = arith.index_cast %c2_i32_116 : i32 to index
    %c0_117 = arith.constant 0 : index
    %c0_118 = arith.constant 0 : index
    %371 = vector.load %arg11[%370, %c0_117, %c0_118] : memref<8x2x128xf32, #tpu.memory_space<vmem>>, vector<1x2x128xf32>
    %372 = vector.shape_cast %371 : vector<1x2x128xf32> to vector<2x128xf32>
    %cst_119 = arith.constant dense<0.000000e+00> : vector<2x128xf32>
    %373 = tpu.matmul %365, %299, %cst_119 {dimension_numbers = #tpu.dot_dimension_numbers<[1], [0], [0], [1], [0, 0, 1, 1], [], []>} : vector<2x32xf32>, vector<32x128xf32>, vector<2x128xf32> -> vector<2x128xf32>
    %374 = arith.addf %372, %373 : vector<2x128xf32>
    %375 = vector.extract_strided_slice %374 {offsets = [0, 0], sizes = [2, 32], strides = [1, 1]} : vector<2x128xf32> to vector<2x32xf32>
    %376 = arith.negf %375 : vector<2x32xf32>
    %377 = math.exp %376 : vector<2x32xf32>
    %cst_120 = arith.constant 1.000000e+00 : f32
    %378 = vector.broadcast %cst_120 : f32 to vector<2x32xf32>
    %379 = arith.addf %378, %377 : vector<2x32xf32>
    %380 = arith.divf %378, %379 : vector<2x32xf32>
    %381 = vector.extract_strided_slice %374 {offsets = [0, 32], sizes = [2, 32], strides = [1, 1]} : vector<2x128xf32> to vector<2x32xf32>
    %382 = arith.negf %381 : vector<2x32xf32>
    %383 = math.exp %382 : vector<2x32xf32>
    %cst_121 = arith.constant 1.000000e+00 : f32
    %384 = vector.broadcast %cst_121 : f32 to vector<2x32xf32>
    %385 = arith.addf %384, %383 : vector<2x32xf32>
    %386 = arith.divf %384, %385 : vector<2x32xf32>
    %387 = vector.extract_strided_slice %374 {offsets = [0, 64], sizes = [2, 32], strides = [1, 1]} : vector<2x128xf32> to vector<2x32xf32>
    %388 = math.tanh %387 : vector<2x32xf32>
    %389 = vector.extract_strided_slice %374 {offsets = [0, 96], sizes = [2, 32], strides = [1, 1]} : vector<2x128xf32> to vector<2x32xf32>
    %390 = arith.negf %389 : vector<2x32xf32>
    %391 = math.exp %390 : vector<2x32xf32>
    %cst_122 = arith.constant 1.000000e+00 : f32
    %392 = vector.broadcast %cst_122 : f32 to vector<2x32xf32>
    %393 = arith.addf %392, %391 : vector<2x32xf32>
    %394 = arith.divf %392, %393 : vector<2x32xf32>
    %395 = arith.mulf %386, %363 : vector<2x32xf32>
    %396 = arith.mulf %380, %388 : vector<2x32xf32>
    %397 = arith.addf %395, %396 : vector<2x32xf32>
    %398 = math.tanh %397 : vector<2x32xf32>
    %399 = arith.mulf %394, %398 : vector<2x32xf32>
    %400 = arith.index_cast %c2_i32_116 : i32 to index
    %c0_123 = arith.constant 0 : index
    %c0_124 = arith.constant 0 : index
    %401 = vector.load %arg7[%400, %c0_123, %c0_124] : memref<8x2x32xf32, #tpu.memory_space<vmem>>, vector<1x2x32xf32>
    %402 = vector.shape_cast %401 : vector<1x2x32xf32> to vector<2x32xf32>
    %403 = vector.shape_cast %399 : vector<2x32xf32> to vector<1x2x32xf32>
    tpu.vector_store %arg7[%400, %c0_123, %c0_124], %403 {strides = array<i32>} : memref<8x2x32xf32, #tpu.memory_space<vmem>>, vector<1x2x32xf32>,
    %c3_i32_125 = arith.constant 3 : i32
    %404 = arith.index_cast %c3_i32_125 : i32 to index
    %c0_126 = arith.constant 0 : index
    %c0_127 = arith.constant 0 : index
    %405 = vector.load %arg11[%404, %c0_126, %c0_127] : memref<8x2x128xf32, #tpu.memory_space<vmem>>, vector<1x2x128xf32>
    %406 = vector.shape_cast %405 : vector<1x2x128xf32> to vector<2x128xf32>
    %cst_128 = arith.constant dense<0.000000e+00> : vector<2x128xf32>
    %407 = tpu.matmul %399, %299, %cst_128 {dimension_numbers = #tpu.dot_dimension_numbers<[1], [0], [0], [1], [0, 0, 1, 1], [], []>} : vector<2x32xf32>, vector<32x128xf32>, vector<2x128xf32> -> vector<2x128xf32>
    %408 = arith.addf %406, %407 : vector<2x128xf32>
    %409 = vector.extract_strided_slice %408 {offsets = [0, 0], sizes = [2, 32], strides = [1, 1]} : vector<2x128xf32> to vector<2x32xf32>
    %410 = arith.negf %409 : vector<2x32xf32>
    %411 = math.exp %410 : vector<2x32xf32>
    %cst_129 = arith.constant 1.000000e+00 : f32
    %412 = vector.broadcast %cst_129 : f32 to vector<2x32xf32>
    %413 = arith.addf %412, %411 : vector<2x32xf32>
    %414 = arith.divf %412, %413 : vector<2x32xf32>
    %415 = vector.extract_strided_slice %408 {offsets = [0, 32], sizes = [2, 32], strides = [1, 1]} : vector<2x128xf32> to vector<2x32xf32>
    %416 = arith.negf %415 : vector<2x32xf32>
    %417 = math.exp %416 : vector<2x32xf32>
    %cst_130 = arith.constant 1.000000e+00 : f32
    %418 = vector.broadcast %cst_130 : f32 to vector<2x32xf32>
    %419 = arith.addf %418, %417 : vector<2x32xf32>
    %420 = arith.divf %418, %419 : vector<2x32xf32>
    %421 = vector.extract_strided_slice %408 {offsets = [0, 64], sizes = [2, 32], strides = [1, 1]} : vector<2x128xf32> to vector<2x32xf32>
    %422 = math.tanh %421 : vector<2x32xf32>
    %423 = vector.extract_strided_slice %408 {offsets = [0, 96], sizes = [2, 32], strides = [1, 1]} : vector<2x128xf32> to vector<2x32xf32>
    %424 = arith.negf %423 : vector<2x32xf32>
    %425 = math.exp %424 : vector<2x32xf32>
    %cst_131 = arith.constant 1.000000e+00 : f32
    %426 = vector.broadcast %cst_131 : f32 to vector<2x32xf32>
    %427 = arith.addf %426, %425 : vector<2x32xf32>
    %428 = arith.divf %426, %427 : vector<2x32xf32>
    %429 = arith.mulf %420, %397 : vector<2x32xf32>
    %430 = arith.mulf %414, %422 : vector<2x32xf32>
    %431 = arith.addf %429, %430 : vector<2x32xf32>
    %432 = math.tanh %431 : vector<2x32xf32>
    %433 = arith.mulf %428, %432 : vector<2x32xf32>
    %434 = arith.index_cast %c3_i32_125 : i32 to index
    %c0_132 = arith.constant 0 : index
    %c0_133 = arith.constant 0 : index
    %435 = vector.load %arg7[%434, %c0_132, %c0_133] : memref<8x2x32xf32, #tpu.memory_space<vmem>>, vector<1x2x32xf32>
    %436 = vector.shape_cast %435 : vector<1x2x32xf32> to vector<2x32xf32>
    %437 = vector.shape_cast %433 : vector<2x32xf32> to vector<1x2x32xf32>
    tpu.vector_store %arg7[%434, %c0_132, %c0_133], %437 {strides = array<i32>} : memref<8x2x32xf32, #tpu.memory_space<vmem>>, vector<1x2x32xf32>,
    %c4_i32_134 = arith.constant 4 : i32
    %438 = arith.index_cast %c4_i32_134 : i32 to index
    %c0_135 = arith.constant 0 : index
    %c0_136 = arith.constant 0 : index
    %439 = vector.load %arg11[%438, %c0_135, %c0_136] : memref<8x2x128xf32, #tpu.memory_space<vmem>>, vector<1x2x128xf32>
    %440 = vector.shape_cast %439 : vector<1x2x128xf32> to vector<2x128xf32>
    %cst_137 = arith.constant dense<0.000000e+00> : vector<2x128xf32>
    %441 = tpu.matmul %433, %299, %cst_137 {dimension_numbers = #tpu.dot_dimension_numbers<[1], [0], [0], [1], [0, 0, 1, 1], [], []>} : vector<2x32xf32>, vector<32x128xf32>, vector<2x128xf32> -> vector<2x128xf32>
    %442 = arith.addf %440, %441 : vector<2x128xf32>
    %443 = vector.extract_strided_slice %442 {offsets = [0, 0], sizes = [2, 32], strides = [1, 1]} : vector<2x128xf32> to vector<2x32xf32>
    %444 = arith.negf %443 : vector<2x32xf32>
    %445 = math.exp %444 : vector<2x32xf32>
    %cst_138 = arith.constant 1.000000e+00 : f32
    %446 = vector.broadcast %cst_138 : f32 to vector<2x32xf32>
    %447 = arith.addf %446, %445 : vector<2x32xf32>
    %448 = arith.divf %446, %447 : vector<2x32xf32>
    %449 = vector.extract_strided_slice %442 {offsets = [0, 32], sizes = [2, 32], strides = [1, 1]} : vector<2x128xf32> to vector<2x32xf32>
    %450 = arith.negf %449 : vector<2x32xf32>
    %451 = math.exp %450 : vector<2x32xf32>
    %cst_139 = arith.constant 1.000000e+00 : f32
    %452 = vector.broadcast %cst_139 : f32 to vector<2x32xf32>
    %453 = arith.addf %452, %451 : vector<2x32xf32>
    %454 = arith.divf %452, %453 : vector<2x32xf32>
    %455 = vector.extract_strided_slice %442 {offsets = [0, 64], sizes = [2, 32], strides = [1, 1]} : vector<2x128xf32> to vector<2x32xf32>
    %456 = math.tanh %455 : vector<2x32xf32>
    %457 = vector.extract_strided_slice %442 {offsets = [0, 96], sizes = [2, 32], strides = [1, 1]} : vector<2x128xf32> to vector<2x32xf32>
    %458 = arith.negf %457 : vector<2x32xf32>
    %459 = math.exp %458 : vector<2x32xf32>
    %cst_140 = arith.constant 1.000000e+00 : f32
    %460 = vector.broadcast %cst_140 : f32 to vector<2x32xf32>
    %461 = arith.addf %460, %459 : vector<2x32xf32>
    %462 = arith.divf %460, %461 : vector<2x32xf32>
    %463 = arith.mulf %454, %431 : vector<2x32xf32>
    %464 = arith.mulf %448, %456 : vector<2x32xf32>
    %465 = arith.addf %463, %464 : vector<2x32xf32>
    %466 = math.tanh %465 : vector<2x32xf32>
    %467 = arith.mulf %462, %466 : vector<2x32xf32>
    %468 = arith.index_cast %c4_i32_134 : i32 to index
    %c0_141 = arith.constant 0 : index
    %c0_142 = arith.constant 0 : index
    %469 = vector.load %arg7[%468, %c0_141, %c0_142] : memref<8x2x32xf32, #tpu.memory_space<vmem>>, vector<1x2x32xf32>
    %470 = vector.shape_cast %469 : vector<1x2x32xf32> to vector<2x32xf32>
    %471 = vector.shape_cast %467 : vector<2x32xf32> to vector<1x2x32xf32>
    tpu.vector_store %arg7[%468, %c0_141, %c0_142], %471 {strides = array<i32>} : memref<8x2x32xf32, #tpu.memory_space<vmem>>, vector<1x2x32xf32>,
    %c5_i32_143 = arith.constant 5 : i32
    %472 = arith.index_cast %c5_i32_143 : i32 to index
    %c0_144 = arith.constant 0 : index
    %c0_145 = arith.constant 0 : index
    %473 = vector.load %arg11[%472, %c0_144, %c0_145] : memref<8x2x128xf32, #tpu.memory_space<vmem>>, vector<1x2x128xf32>
    %474 = vector.shape_cast %473 : vector<1x2x128xf32> to vector<2x128xf32>
    %cst_146 = arith.constant dense<0.000000e+00> : vector<2x128xf32>
    %475 = tpu.matmul %467, %299, %cst_146 {dimension_numbers = #tpu.dot_dimension_numbers<[1], [0], [0], [1], [0, 0, 1, 1], [], []>} : vector<2x32xf32>, vector<32x128xf32>, vector<2x128xf32> -> vector<2x128xf32>
    %476 = arith.addf %474, %475 : vector<2x128xf32>
    %477 = vector.extract_strided_slice %476 {offsets = [0, 0], sizes = [2, 32], strides = [1, 1]} : vector<2x128xf32> to vector<2x32xf32>
    %478 = arith.negf %477 : vector<2x32xf32>
    %479 = math.exp %478 : vector<2x32xf32>
    %cst_147 = arith.constant 1.000000e+00 : f32
    %480 = vector.broadcast %cst_147 : f32 to vector<2x32xf32>
    %481 = arith.addf %480, %479 : vector<2x32xf32>
    %482 = arith.divf %480, %481 : vector<2x32xf32>
    %483 = vector.extract_strided_slice %476 {offsets = [0, 32], sizes = [2, 32], strides = [1, 1]} : vector<2x128xf32> to vector<2x32xf32>
    %484 = arith.negf %483 : vector<2x32xf32>
    %485 = math.exp %484 : vector<2x32xf32>
    %cst_148 = arith.constant 1.000000e+00 : f32
    %486 = vector.broadcast %cst_148 : f32 to vector<2x32xf32>
    %487 = arith.addf %486, %485 : vector<2x32xf32>
    %488 = arith.divf %486, %487 : vector<2x32xf32>
    %489 = vector.extract_strided_slice %476 {offsets = [0, 64], sizes = [2, 32], strides = [1, 1]} : vector<2x128xf32> to vector<2x32xf32>
    %490 = math.tanh %489 : vector<2x32xf32>
    %491 = vector.extract_strided_slice %476 {offsets = [0, 96], sizes = [2, 32], strides = [1, 1]} : vector<2x128xf32> to vector<2x32xf32>
    %492 = arith.negf %491 : vector<2x32xf32>
    %493 = math.exp %492 : vector<2x32xf32>
    %cst_149 = arith.constant 1.000000e+00 : f32
    %494 = vector.broadcast %cst_149 : f32 to vector<2x32xf32>
    %495 = arith.addf %494, %493 : vector<2x32xf32>
    %496 = arith.divf %494, %495 : vector<2x32xf32>
    %497 = arith.mulf %488, %465 : vector<2x32xf32>
    %498 = arith.mulf %482, %490 : vector<2x32xf32>
    %499 = arith.addf %497, %498 : vector<2x32xf32>
    %500 = math.tanh %499 : vector<2x32xf32>
    %501 = arith.mulf %496, %500 : vector<2x32xf32>
    %502 = arith.index_cast %c5_i32_143 : i32 to index
    %c0_150 = arith.constant 0 : index
    %c0_151 = arith.constant 0 : index
    %503 = vector.load %arg7[%502, %c0_150, %c0_151] : memref<8x2x32xf32, #tpu.memory_space<vmem>>, vector<1x2x32xf32>
    %504 = vector.shape_cast %503 : vector<1x2x32xf32> to vector<2x32xf32>
    %505 = vector.shape_cast %501 : vector<2x32xf32> to vector<1x2x32xf32>
    tpu.vector_store %arg7[%502, %c0_150, %c0_151], %505 {strides = array<i32>} : memref<8x2x32xf32, #tpu.memory_space<vmem>>, vector<1x2x32xf32>,
    %c6_i32_152 = arith.constant 6 : i32
    %506 = arith.index_cast %c6_i32_152 : i32 to index
    %c0_153 = arith.constant 0 : index
    %c0_154 = arith.constant 0 : index
    %507 = vector.load %arg11[%506, %c0_153, %c0_154] : memref<8x2x128xf32, #tpu.memory_space<vmem>>, vector<1x2x128xf32>
    %508 = vector.shape_cast %507 : vector<1x2x128xf32> to vector<2x128xf32>
    %cst_155 = arith.constant dense<0.000000e+00> : vector<2x128xf32>
    %509 = tpu.matmul %501, %299, %cst_155 {dimension_numbers = #tpu.dot_dimension_numbers<[1], [0], [0], [1], [0, 0, 1, 1], [], []>} : vector<2x32xf32>, vector<32x128xf32>, vector<2x128xf32> -> vector<2x128xf32>
    %510 = arith.addf %508, %509 : vector<2x128xf32>
    %511 = vector.extract_strided_slice %510 {offsets = [0, 0], sizes = [2, 32], strides = [1, 1]} : vector<2x128xf32> to vector<2x32xf32>
    %512 = arith.negf %511 : vector<2x32xf32>
    %513 = math.exp %512 : vector<2x32xf32>
    %cst_156 = arith.constant 1.000000e+00 : f32
    %514 = vector.broadcast %cst_156 : f32 to vector<2x32xf32>
    %515 = arith.addf %514, %513 : vector<2x32xf32>
    %516 = arith.divf %514, %515 : vector<2x32xf32>
    %517 = vector.extract_strided_slice %510 {offsets = [0, 32], sizes = [2, 32], strides = [1, 1]} : vector<2x128xf32> to vector<2x32xf32>
    %518 = arith.negf %517 : vector<2x32xf32>
    %519 = math.exp %518 : vector<2x32xf32>
    %cst_157 = arith.constant 1.000000e+00 : f32
    %520 = vector.broadcast %cst_157 : f32 to vector<2x32xf32>
    %521 = arith.addf %520, %519 : vector<2x32xf32>
    %522 = arith.divf %520, %521 : vector<2x32xf32>
    %523 = vector.extract_strided_slice %510 {offsets = [0, 64], sizes = [2, 32], strides = [1, 1]} : vector<2x128xf32> to vector<2x32xf32>
    %524 = math.tanh %523 : vector<2x32xf32>
    %525 = vector.extract_strided_slice %510 {offsets = [0, 96], sizes = [2, 32], strides = [1, 1]} : vector<2x128xf32> to vector<2x32xf32>
    %526 = arith.negf %525 : vector<2x32xf32>
    %527 = math.exp %526 : vector<2x32xf32>
    %cst_158 = arith.constant 1.000000e+00 : f32
    %528 = vector.broadcast %cst_158 : f32 to vector<2x32xf32>
    %529 = arith.addf %528, %527 : vector<2x32xf32>
    %530 = arith.divf %528, %529 : vector<2x32xf32>
    %531 = arith.mulf %522, %499 : vector<2x32xf32>
    %532 = arith.mulf %516, %524 : vector<2x32xf32>
    %533 = arith.addf %531, %532 : vector<2x32xf32>
    %534 = math.tanh %533 : vector<2x32xf32>
    %535 = arith.mulf %530, %534 : vector<2x32xf32>
    %536 = arith.index_cast %c6_i32_152 : i32 to index
    %c0_159 = arith.constant 0 : index
    %c0_160 = arith.constant 0 : index
    %537 = vector.load %arg7[%536, %c0_159, %c0_160] : memref<8x2x32xf32, #tpu.memory_space<vmem>>, vector<1x2x32xf32>
    %538 = vector.shape_cast %537 : vector<1x2x32xf32> to vector<2x32xf32>
    %539 = vector.shape_cast %535 : vector<2x32xf32> to vector<1x2x32xf32>
    tpu.vector_store %arg7[%536, %c0_159, %c0_160], %539 {strides = array<i32>} : memref<8x2x32xf32, #tpu.memory_space<vmem>>, vector<1x2x32xf32>,
    %c7_i32_161 = arith.constant 7 : i32
    %540 = arith.index_cast %c7_i32_161 : i32 to index
    %c0_162 = arith.constant 0 : index
    %c0_163 = arith.constant 0 : index
    %541 = vector.load %arg11[%540, %c0_162, %c0_163] : memref<8x2x128xf32, #tpu.memory_space<vmem>>, vector<1x2x128xf32>
    %542 = vector.shape_cast %541 : vector<1x2x128xf32> to vector<2x128xf32>
    %cst_164 = arith.constant dense<0.000000e+00> : vector<2x128xf32>
    %543 = tpu.matmul %535, %299, %cst_164 {dimension_numbers = #tpu.dot_dimension_numbers<[1], [0], [0], [1], [0, 0, 1, 1], [], []>} : vector<2x32xf32>, vector<32x128xf32>, vector<2x128xf32> -> vector<2x128xf32>
    %544 = arith.addf %542, %543 : vector<2x128xf32>
    %545 = vector.extract_strided_slice %544 {offsets = [0, 0], sizes = [2, 32], strides = [1, 1]} : vector<2x128xf32> to vector<2x32xf32>
    %546 = arith.negf %545 : vector<2x32xf32>
    %547 = math.exp %546 : vector<2x32xf32>
    %cst_165 = arith.constant 1.000000e+00 : f32
    %548 = vector.broadcast %cst_165 : f32 to vector<2x32xf32>
    %549 = arith.addf %548, %547 : vector<2x32xf32>
    %550 = arith.divf %548, %549 : vector<2x32xf32>
    %551 = vector.extract_strided_slice %544 {offsets = [0, 32], sizes = [2, 32], strides = [1, 1]} : vector<2x128xf32> to vector<2x32xf32>
    %552 = arith.negf %551 : vector<2x32xf32>
    %553 = math.exp %552 : vector<2x32xf32>
    %cst_166 = arith.constant 1.000000e+00 : f32
    %554 = vector.broadcast %cst_166 : f32 to vector<2x32xf32>
    %555 = arith.addf %554, %553 : vector<2x32xf32>
    %556 = arith.divf %554, %555 : vector<2x32xf32>
    %557 = vector.extract_strided_slice %544 {offsets = [0, 64], sizes = [2, 32], strides = [1, 1]} : vector<2x128xf32> to vector<2x32xf32>
    %558 = math.tanh %557 : vector<2x32xf32>
    %559 = vector.extract_strided_slice %544 {offsets = [0, 96], sizes = [2, 32], strides = [1, 1]} : vector<2x128xf32> to vector<2x32xf32>
    %560 = arith.negf %559 : vector<2x32xf32>
    %561 = math.exp %560 : vector<2x32xf32>
    %cst_167 = arith.constant 1.000000e+00 : f32
    %562 = vector.broadcast %cst_167 : f32 to vector<2x32xf32>
    %563 = arith.addf %562, %561 : vector<2x32xf32>
    %564 = arith.divf %562, %563 : vector<2x32xf32>
    %565 = arith.mulf %556, %533 : vector<2x32xf32>
    %566 = arith.mulf %550, %558 : vector<2x32xf32>
    %567 = arith.addf %565, %566 : vector<2x32xf32>
    %568 = math.tanh %567 : vector<2x32xf32>
    %569 = arith.mulf %564, %568 : vector<2x32xf32>
    %570 = arith.index_cast %c7_i32_161 : i32 to index
    %c0_168 = arith.constant 0 : index
    %c0_169 = arith.constant 0 : index
    %571 = vector.load %arg7[%570, %c0_168, %c0_169] : memref<8x2x32xf32, #tpu.memory_space<vmem>>, vector<1x2x32xf32>
    %572 = vector.shape_cast %571 : vector<1x2x32xf32> to vector<2x32xf32>
    %573 = vector.shape_cast %569 : vector<2x32xf32> to vector<1x2x32xf32>
    tpu.vector_store %arg7[%570, %c0_168, %c0_169], %573 {strides = array<i32>} : memref<8x2x32xf32, #tpu.memory_space<vmem>>, vector<1x2x32xf32>,
    %c8_i32_170 = arith.constant 8 : i32
    %c1 = arith.constant 1 : index
    %c0_171 = arith.constant 0 : index
    %c0_172 = arith.constant 0 : index
    %574 = vector.load %arg8[%c1, %c0_171, %c0_172] : memref<2x2x32xf32, #tpu.memory_space<vmem>>, vector<1x2x32xf32>
    %575 = vector.shape_cast %574 : vector<1x2x32xf32> to vector<2x32xf32>
    %576 = vector.shape_cast %569 : vector<2x32xf32> to vector<1x2x32xf32>
    tpu.vector_store %arg8[%c1, %c0_171, %c0_172], %576 {strides = array<i32>} : memref<2x2x32xf32, #tpu.memory_space<vmem>>, vector<1x2x32xf32>,
    %c1_173 = arith.constant 1 : index
    %c0_174 = arith.constant 0 : index
    %c0_175 = arith.constant 0 : index
    %577 = vector.load %arg9[%c1_173, %c0_174, %c0_175] : memref<2x2x32xf32, #tpu.memory_space<vmem>>, vector<1x2x32xf32>
    %578 = vector.shape_cast %577 : vector<1x2x32xf32> to vector<2x32xf32>
    %579 = vector.shape_cast %567 : vector<2x32xf32> to vector<1x2x32xf32>
    tpu.vector_store %arg9[%c1_173, %c0_174, %c0_175], %579 {strides = array<i32>} : memref<2x2x32xf32, #tpu.memory_space<vmem>>, vector<1x2x32xf32>,
    return
  }
}

</mosaic_0001>

<bundles_post_ra>
// kernel: tpu_custom_call.1
= control target key start
LH: loop header
LB: loop body
LE: loop exit
PB: predicated region body
PF: predicated region fallthrough
CT: control target
= control target key end

     0   :  { %15 = vsyncpa [#allocation5], 0  ;;  %s3232_s0 = inlined_call_operand.vmem [shape: f32[8,2,4], index: 0, kind: input, shape index: {}]   ;;  %s3233_s1 = inlined_call_operand.hbm [shape: f32[4,128], index: 1, kind: input, shape index: {}]   ;;  %s3234_s2 = inlined_call_operand.hbm [shape: f32[32,128], index: 2, kind: input, shape index: {}]   ;;  %s3235_s3 = inlined_call_operand.vmem [shape: f32[1,128], index: 3, kind: input, shape index: {}]   ;;  %s3236_s4 = inlined_call_operand.hbm [shape: f32[32,128], index: 4, kind: input, shape index: {}]   ;;  %s3237_s5 = inlined_call_operand.vmem [shape: f32[32,128], index: 5, kind: input, shape index: {}]   ;;  %s3238_s6 = inlined_call_operand.vmem [shape: f32[1,128], index: 6, kind: input, shape index: {}]   ;;  %s3239_s7 = inlined_call_operand.hbm [shape: f32[8,2,32], index: 7, kind: output, shape index: {0}]   ;;  %s3240_s8 = inlined_call_operand.hbm [shape: f32[2,2,32], index: 8, kind: output, shape index: {1}]   ;;  %s3241_s9 = inlined_call_operand.hbm [shape: f32[2,2,32], index: 9, kind: output, shape index: {2}]  }
   0x1   :  { %16 = vsyncpa [#allocation8], 0 }
   0x2   :  { %17 = vsyncpa [#allocation6], 0 }
   0x3   :  { %18 = vsyncpa [#allocation12], 0  ;;  %s2794_s30 = smov [#allocation7]  }
   0x4   :  { %s36_s10 = sshll.u32 %s2794_s30, 4  ;;  %s37_s10 = int_to_ptr.vmem [resolvable:$true] %s36_s10 }
   0x5   :  { %s2674_s11 = scalar_lea.vmem %s37_s10, 512  ;;  %p2679_p1 = scmp.lt.s32.totalorder %s37_s10, %s37_s10 }
   0x6   :  { %p2675_p0 = scmp.ne.s32.totalorder %s37_s10, %s2674_s11  ;;  %p2680_p2 = scmp.lt.s32.totalorder %s2674_s11, %s2674_s11 }
   0x8   :  { %p2681_p3 = por %p2680_p2, %p2679_p1 }
   0xa   :  { %p2682_p4 = pnand %p2681_p3, %p2675_p0 }
   0xc   :  { %2685 = shalt.err (!%p2682_p4)
}
   0xd   :  { %s2795_s12 = smov 128   ;;  %s2796_s13 = smov 8  }
   0xe   :  { %42 = dma.hbm_to_vmem [thread:$0]  %s3234_s2, 512, %s37_s10, [#allocation8], %s2795_s12, %s2795_s12, %s2796_s13  }
   0xf   :  { %s2797_s16 = smov [#allocation4]   ;;  %s2798_s18 = smov [#allocation9]  }
  0x10   :  { %s27_s17 = sshll.u32 %s2797_s16, 4  ;;  %s50_s19 = sshll.u32 %s2798_s18, 4  ;;  %s28_s17 = int_to_ptr.vmem [resolvable:$true] %s27_s17  ;;  %s51_s19 = int_to_ptr.vmem [resolvable:$true] %s50_s19 }
  0x11   :  { %s2694_s20 = scalar_lea.vmem %s28_s17, 64  ;;  %p2699_p6 = scmp.lt.s32.totalorder %s28_s17, %s28_s17 }
  0x12   :  { %p2695_p5 = scmp.ne.s32.totalorder %s28_s17, %s2694_s20  ;;  %p2700_p7 = scmp.lt.s32.totalorder %s2694_s20, %s2694_s20 }
  0x14   :  { %p2701_p8 = por %p2700_p7, %p2699_p6 }
  0x16   :  { %p2702_p9 = pnand %p2701_p8, %p2695_p5 }
  0x18   :  { %2705 = shalt.err (!%p2702_p9)
}
  0x19   :  { %30 = dma.hbm_to_vmem [thread:$0]  %s3233_s1, 64, %s28_s17, [#allocation5]  }
  0x1a   :  { %s2714_s23 = scalar_lea.vmem %s51_s19, 512  ;;  %p2719_p11 = scmp.lt.s32.totalorder %s51_s19, %s51_s19 }
  0x1b   :  { %p2715_p10 = scmp.ne.s32.totalorder %s51_s19, %s2714_s23  ;;  %p2720_p12 = scmp.lt.s32.totalorder %s2714_s23, %s2714_s23 }
  0x1d   :  { %p2721_p13 = por %p2720_p12, %p2719_p11 }
  0x1f   :  { %p2722_p0 = pnand %p2721_p13, %p2715_p10 }
  0x21   :  { %2725 = shalt.err (!%p2722_p0)
}
  0x22   :  { %56 = dma.hbm_to_vmem [thread:$0]  %s3236_s4, 512, %s51_s19, [#allocation8], %s2795_s12, %s2795_s12, %s2796_s13  }
  0x23   :  { %2786 = dma.done.wait [#allocation5], 64  }
  0x24   :  { %2787 = vsyncadd [#allocation5], 4294967232 }
  0x25   :  { %2788 = dma.done.wait [#allocation8], 1024  }
  0x26   :  { %2789 = vsyncadd [#allocation8], 4294966272  ;;  %v99_v0 = vlaneseq  ;;  %v2799_v1 = vmov 1983009808   ;;  %v2800_v4 = vmov 0.0   ;;  %vm2801_vm0 = vmmov 0  }
  0x27   :  { %v97_v2 = vunpack.c.l.s4 %v2799_v1  ;;  %2336 = vmatprep.subr.mxu1 %v2800_v4  ;;  %2344 = vmatprep.mubr.msk.f32.mxu1 %vm2801_vm0, %v2800_v4  ;;  %vm133_vm1 = vcmask 1043456   ;;  %v78_v7 = vld [vmem:[#allocation4] sm:$0xf]  ;;  %v72_v10 = vld [vmem:[%s3232_s0 + $0x4] sm:$0x3]  ;;  %v2900_v22 = vld [vmem:[#allocation7 + $0x10] sm:$0xff] }
  0x28   :  { %v100_v3 = vshrl.u32 %v99_v0, 7  ;;  %v70_v8 = vld [vmem:[%s3232_s0] sm:$0x3]  ;;  %v71_v9 = vld [vmem:[%s3232_s0 + $0x2] sm:$0x3]  ;;  %2331 = vmatprep.subr.msk.mxu0 %vm133_vm1, %v78_v7  ;;  %vm128_vm2 = vcmask 31744  }
  0x29   :  { %v98_v5 = vunpack.c.0.s8 %v97_v2  ;;  %v73_v11 = vld [vmem:[%s3232_s0 + $0x6] sm:$0x3]  ;;  %v94_v12 = vcombine.low %v70_v8, %v71_v9  ;;  %v74_v13 = vld [vmem:[%s3232_s0 + $0x8] sm:$0x3]  ;;  %2332 = vmatpush3.msk.msra.mxu0 %vm133_vm1, %v78_v7  ;;  %v75_v15 = vld [vmem:[%s3232_s0 + $0xa] sm:$0x3] }
  0x2a   :  { %v95_v14 = vcombine.low %v72_v10, %v73_v11  ;;  %v76_v16 = vld [vmem:[%s3232_s0 + $0xc] sm:$0x3]  ;;  %v77_v17 = vld [vmem:[%s3232_s0 + $0xe] sm:$0x3]  ;;  %v111_v19 = vcombine.low %v74_v13, %v75_v15  ;;  %v2898_v21 = vld [vmem:[#allocation7 + $0x18] sm:$0xff]  ;;  %2347 = vmatprep.subr.mxu0 %v2800_v4  ;;  %s2803_s19 = smov 32  }
  0x2b   :  { %v2871_v6 = vsub.s32 %v98_v5, %v100_v3  ;;  %v112_v20 = vcombine.low %v76_v16, %v77_v17  ;;  %2337 = vmatpush3.msra.mxu1 %v2898_v21  ;;  %v2908_v26 = vld [vmem:[#allocation7 + $0x8] sm:$0xff]  ;;  %v2912_v29 = vld [vmem:[#allocation7] sm:$0xff]  ;;  %v2197_v30 = vld [vmem:[%s3235_s3] ss:$0 sm:$0xff]  ;;  %s2802_s3 = smov 64   ;;  %vm372_vm3 = vcmask 254976  }
  0x2c   :  { %2338 = vmatprep.subr.mxu1 %v2800_v4  ;;  %vm269_vm4 = vcmask 261120   ;;  %s2805_s26 = smov [#allocation11]   ;;  %s2806_s28 = smov [#allocation10]  }
  0x2d   :  { %v102_v18 = vrot.slane %v94_v12, %v2871_v6  ;;  %v109_v23 = vrot.slane %v95_v14, %v2871_v6  ;;  %v119_v24 = vrot.slane %v111_v19, %v2871_v6  ;;  %v126_v25 = vrot.slane %v112_v20, %v2871_v6  ;;  %2339 = vmatpush3.msra.mxu1 %v2900_v22  ;;  %s2165_s27 = sshll.u32 %s2805_s26, 4  ;;  %s2153_s29 = sshll.u32 %s2806_s28, 4  ;;  %s2166_s27 = int_to_ptr.vmem [resolvable:$true] %s2165_s27  ;;  %s2154_s29 = int_to_ptr.vmem [resolvable:$true] %s2153_s29 }
  0x2e   :  { %2340 = vmatprep.subr.mxu1 %v2800_v4  ;;  %s2807_s30 = smov [#allocation13]   ;;  %s2726_s11 = scalar_lea.vmem %s2166_s27, 64 }
  0x2f   :  { %v110_v27 = vcombine.low %v102_v18, %v109_v23  ;;  %v127_v28 = vcombine.low %v119_v24, %v126_v25  ;;  %2341 = vmatpush3.msra.mxu1 %v2908_v26  ;;  %s2177_s10 = sshll.u32 %s2807_s30, 4  ;;  %p2727_p1 = scmp.ne.s32.totalorder %s2166_s27, %s2726_s11  ;;  %s3209_s10 = int_to_ptr.vmem [resolvable:$true] %s2177_s10 }
  0x30   :  { %2342 = vmatprep.subr.mxu1 %v2800_v4  ;;  %p2731_p2 = scmp.lt.s32.totalorder %s2166_s27, %s2166_s27  ;;  %p2732_p3 = scmp.lt.s32.totalorder %s2726_s11, %s2726_s11 }
  0x31   :  { %2333 = vmatprep.mubr.msk.f32.mxu0 %vm128_vm2, %v110_v27  ;;  %2343 = vmatpush3.msra.mxu1 %v2912_v29 }
  0x32   :  { %2334 = vmatmul.mubr.msk.f32.vlgmr.msra.gmra.mxu0 %vm128_vm2, %v127_v28  ;;  %2345 = vmatmul.mubr.f32.vlgmr.msra.gmra.mxu1 %v2800_v4  ;;  %p2733_p4 = por %p2732_p3, %p2731_p2 }
  0x33   :  { %2348 = vmatpush3.msra.mxu0 %v2898_v21  ;;  %2355 = vmatprep.mubr.msk.f32.mxu0 %vm2801_vm0, %v2800_v4 }
  0x34   :  { %2349 = vmatprep.subr.mxu0 %v2800_v4  ;;  %2358 = vmatprep.subr.mxu1 %v2800_v4  ;;  %p2734_p5 = pnand %p2733_p4, %p2727_p1 }
  0x35   :  { %2350 = vmatpush3.msra.mxu0 %v2900_v22  ;;  %2359 = vmatpush3.msra.mxu1 %v2898_v21 }
  0x36   :  { %2351 = vmatprep.subr.mxu0 %v2800_v4  ;;  %2360 = vmatprep.subr.mxu1 %v2800_v4 }
  0x37   :  { %2352 = vmatpush3.msra.mxu0 %v2908_v26  ;;  %2361 = vmatpush3.msra.mxu1 %v2900_v22 }
  0x38   :  { %2353 = vmatprep.subr.mxu0 %v2800_v4  ;;  %2362 = vmatprep.subr.mxu1 %v2800_v4 }
  0x39   :  { %2354 = vmatpush3.msra.mxu0 %v2912_v29  ;;  %2366 = vmatprep.mubr.msk.f32.mxu1 %vm2801_vm0, %v2800_v4 }
  0x3a   :  { %2363 = vmatpush3.msra.mxu1 %v2908_v26  ;;  %2369 = vmatprep.subr.mxu0 %v2800_v4 }
  0x3b   :  { %2364 = vmatprep.subr.mxu1 %v2800_v4 }
  0x3c   :  { %2365 = vmatpush3.msra.mxu1 %v2912_v29 }
  0x3d   :  { %2380 = vmatprep.subr.mxu1 %v2800_v4 }
  0xf2   :  { %v2335_v31 = vpop.f32.mrf.mxu0  ;;  %v339_v34 = vpop.f32.mrf.mxu1 }
  0xf3   :  { %v209_v32 = vadd.f32 %v2335_v31, %v2197_v30 }
  0xf4   :  { %v203_v33 = vpop.f32.mrf.mxu0  ;;  %v2346_v38 = vpop.f32.mrf.mxu1 }
  0xf5   :  { %v231_v35 = vcombine.high %v209_v32, %v209_v32  ;;  %v238_v36 = vrot.slane %v209_v32, %v2871_v6  ;;  %2203 = vst.sshfl [vmem:[#allocation3 + $0x8] sm:$0x3 pattern:$0x76325410] %v209_v32  ;;  %v204_v37 = vadd.f32 %v2197_v30, %v203_v33 }
  0xf7   :  { %v245_v39 = vrot.slane %v231_v35, %v2871_v6  ;;  %v246_v40 = vcombine.high %v238_v36, %v238_v36  ;;  %2204 = vst.sshfl [vmem:[#allocation3 + $0xc] sm:$0x3 pattern:$0x76325410] %v231_v35  ;;  %v214_v41 = vcombine.high %v204_v37, %v204_v37  ;;  %v221_v42 = vrot.slane %v204_v37, %v2871_v6 }
  0xf8   :  { %2201 = vst.sshfl [vmem:[#allocation3] sm:$0x3 pattern:$0x76325410] %v204_v37 }
  0xf9   :  { %v247_v43 = vcombine.high %v245_v39, %v245_v39  ;;  %261 = vst [vmem:[#allocation3 + $0xa] sm:$0x3] %v246_v40  ;;  %v228_v44 = vrot.slane %v214_v41, %v2871_v6  ;;  %v229_v45 = vcombine.high %v221_v42, %v221_v42  ;;  %2202 = vst.sshfl [vmem:[#allocation3 + $0x4] sm:$0x3 pattern:$0x76325410] %v214_v41 }
  0xfb   :  { %263 = vst [vmem:[#allocation3 + $0xe] sm:$0x3] %v247_v43  ;;  %v230_v46 = vcombine.high %v228_v44, %v228_v44  ;;  %257 = vst [vmem:[#allocation3 + $0x2] sm:$0x3] %v229_v45 }
  0xfd   :  { %259 = vst [vmem:[#allocation3 + $0x6] sm:$0x3] %v230_v46 }
  0xff   :  { %v268_v47 = vld [vmem:[#allocation3] sm:$0x3] }
 0x100   :  { %v343_v48 = vadd.f32 %v339_v34, %v268_v47  ;;  %v480_v19 = vld [vmem:[#allocation3 + $0x4] sm:$0x3] }
 0x102   :  { %2538 = vtanh.f32 %v343_v48  ;;  %v2205_v50 = vmul.f32 -1.442695, %v343_v48  ;;  %v375_v63 = vld [vmem:[#allocation3 + $0x2] sm:$0x3] }
 0x104   :  { %2540 = vpow2.f32 %v2205_v50  ;;  %v585_v41 = vld [vmem:[#allocation3 + $0x6] sm:$0x3] }
 0x10f   :  { %v2539_v49 = vpop.eup %2538 }
 0x110   :  { %353 = vrot.lane.b32.xlu0 %v2539_v49, %s2802_s3 }
 0x111   :  { %v2541_v51 = vpop.eup %2540 }
 0x112   :  { %v347_v52 = vadd.f32 1.0, %v2541_v51 }
 0x114   :  { %2542 = vrcp.f32 %v347_v52 }
 0x121   :  { %v2543_v53 = vpop.eup %2542 }
 0x122   :  { %v351_v56 = vmul.f32 0.0, %v2543_v53 }
 0x182   :  { %v354_v54 = vpop.permute.xlu0 %353 }
 0x183   :  { %v356_v55 = vmul.f32 %v2543_v53, %v354_v54 }
 0x185   :  { %358 = vrot.lane.b32.xlu0 %v356_v55, %s2803_s19 }
 0x1f7   :  { %v359_v57 = vpop.permute.xlu0 %358 }
 0x1f8   :  { %v361_v58 = vadd.f32 %v359_v57, %v351_v56 }
 0x1fa   :  { %2544 = vtanh.f32 %v361_v58 }
 0x207   :  { %v2545_v59 = vpop.eup %2544 }
 0x208   :  { %364 = vrot.lane.b32.xlu1 %v2545_v59, %s2802_s3  ;;  %v690_v59 = vld [vmem:[#allocation3 + $0x8] sm:$0x3] }
 0x27a   :  { %v365_v60 = vpop.permute.xlu1 %364 }
 0x27b   :  { %v367_v61 = vmul.f32 %v2543_v53, %v365_v60 }
 0x27d   :  { %369 = vrot.lane.b32.xlu1 %v367_v61, %s2803_s19 }
 0x2ef   :  { %v370_v62 = vpop.permute.xlu1 %369 }
 0x2f0   :  { %373 = vst.msk [vmem:[#allocation2] sm:$0x3] %vm372_vm3, %v370_v62  ;;  %2356 = vmatmul.mubr.msk.f32.vlgmr.msra.gmra.mxu0 %vm269_vm4, %v370_v62 }
 0x2f1   :  { %2370 = vmatpush3.msra.mxu0 %v2898_v21  ;;  %2377 = vmatprep.mubr.msk.f32.mxu0 %vm2801_vm0, %v2800_v4 }
 0x2f2   :  { %2371 = vmatprep.subr.mxu0 %v2800_v4 }
 0x2f3   :  { %2372 = vmatpush3.msra.mxu0 %v2900_v22 }
 0x2f4   :  { %2373 = vmatprep.subr.mxu0 %v2800_v4 }
 0x2f5   :  { %2374 = vmatpush3.msra.mxu0 %v2908_v26 }
 0x2f6   :  { %2375 = vmatprep.subr.mxu0 %v2800_v4 }
 0x2f7   :  { %2376 = vmatpush3.msra.mxu0 %v2912_v29 }
 0x2f8   :  { %2391 = vmatprep.subr.mxu0 %v2800_v4 }
 0x3b0   :  { %v444_v0 = vpop.f32.mrf.mxu0 }
 0x3b1   :  { %v448_v1 = vadd.f32 %v444_v0, %v375_v63 }
 0x3b2   :  { %v2357_v2 = vpop.f32.mrf.mxu0 }
 0x3b3   :  { %2546 = vtanh.f32 %v448_v1  ;;  %v2207_v5 = vmul.f32 -1.442695, %v448_v1 }
 0x3b5   :  { %2548 = vpow2.f32 %v2207_v5 }
 0x3c0   :  { %v2547_v3 = vpop.eup %2546 }
 0x3c1   :  { %458 = vrot.lane.b32.xlu0 %v2547_v3, %s2802_s3 }
 0x3c2   :  { %v2549_v7 = vpop.eup %2548 }
 0x3c3   :  { %v452_v8 = vadd.f32 1.0, %v2549_v7 }
 0x3c5   :  { %2550 = vrcp.f32 %v452_v8 }
 0x3d2   :  { %v2551_v9 = vpop.eup %2550 }
 0x3d3   :  { %v456_v12 = vmul.f32 %v2551_v9, %v361_v58 }
 0x433   :  { %v459_v10 = vpop.permute.xlu0 %458 }
 0x434   :  { %v461_v11 = vmul.f32 %v2551_v9, %v459_v10 }
 0x436   :  { %463 = vrot.lane.b32.xlu1 %v461_v11, %s2803_s19 }
 0x4a8   :  { %v464_v13 = vpop.permute.xlu1 %463 }
 0x4a9   :  { %v466_v14 = vadd.f32 %v464_v13, %v456_v12 }
 0x4ab   :  { %2552 = vtanh.f32 %v466_v14 }
 0x4b8   :  { %v2553_v15 = vpop.eup %2552 }
 0x4b9   :  { %469 = vrot.lane.b32.xlu0 %v2553_v15, %s2802_s3  ;;  %v795_v15 = vld [vmem:[#allocation3 + $0xa] sm:$0x3] }
 0x52b   :  { %v470_v16 = vpop.permute.xlu0 %469 }
 0x52c   :  { %v472_v17 = vmul.f32 %v2551_v9, %v470_v16 }
 0x52e   :  { %474 = vrot.lane.b32.xlu1 %v472_v17, %s2803_s19 }
 0x5a0   :  { %v475_v18 = vpop.permute.xlu1 %474 }
 0x5a1   :  { %478 = vst.msk [vmem:[#allocation2 + $0x2] sm:$0x3] %vm372_vm3, %v475_v18  ;;  %2367 = vmatmul.mubr.msk.f32.vlgmr.msra.gmra.mxu1 %vm269_vm4, %v475_v18 }
 0x5a2   :  { %2381 = vmatpush3.msra.mxu1 %v2898_v21  ;;  %2388 = vmatprep.mubr.msk.f32.mxu1 %vm2801_vm0, %v2800_v4 }
 0x5a3   :  { %2382 = vmatprep.subr.mxu1 %v2800_v4 }
 0x5a4   :  { %2383 = vmatpush3.msra.mxu1 %v2900_v22 }
 0x5a5   :  { %2384 = vmatprep.subr.mxu1 %v2800_v4 }
 0x5a6   :  { %2385 = vmatpush3.msra.mxu1 %v2908_v26 }
 0x5a7   :  { %2386 = vmatprep.subr.mxu1 %v2800_v4 }
 0x5a8   :  { %2387 = vmatpush3.msra.mxu1 %v2912_v29 }
 0x5a9   :  { %2402 = vmatprep.subr.mxu1 %v2800_v4 }
 0x661   :  { %v549_v20 = vpop.f32.mrf.mxu1 }
 0x662   :  { %v553_v23 = vadd.f32 %v549_v20, %v480_v19 }
 0x663   :  { %v2368_v24 = vpop.f32.mrf.mxu1 }
 0x664   :  { %2554 = vtanh.f32 %v553_v23  ;;  %v2209_v27 = vmul.f32 -1.442695, %v553_v23 }
 0x666   :  { %2556 = vpow2.f32 %v2209_v27 }
 0x671   :  { %v2555_v25 = vpop.eup %2554 }
 0x672   :  { %563 = vrot.lane.b32.xlu0 %v2555_v25, %s2802_s3 }
 0x673   :  { %v2557_v28 = vpop.eup %2556 }
 0x674   :  { %v557_v30 = vadd.f32 1.0, %v2557_v28 }
 0x676   :  { %2558 = vrcp.f32 %v557_v30 }
 0x683   :  { %v2559_v31 = vpop.eup %2558 }
 0x684   :  { %v561_v34 = vmul.f32 %v2559_v31, %v466_v14 }
 0x6e4   :  { %v564_v32 = vpop.permute.xlu0 %563 }
 0x6e5   :  { %v566_v33 = vmul.f32 %v2559_v31, %v564_v32 }
 0x6e7   :  { %568 = vrot.lane.b32.xlu1 %v566_v33, %s2803_s19  ;;  %v1116_v33 = vld [vmem:[#allocation2 + $0x2] sm:$0x3] }
 0x759   :  { %v569_v35 = vpop.permute.xlu1 %568 }
 0x75a   :  { %v571_v36 = vadd.f32 %v569_v35, %v561_v34 }
 0x75c   :  { %2560 = vtanh.f32 %v571_v36 }
 0x769   :  { %v2561_v37 = vpop.eup %2560 }
 0x76a   :  { %574 = vrot.lane.b32.xlu0 %v2561_v37, %s2802_s3 }
 0x7dc   :  { %v575_v38 = vpop.permute.xlu0 %574 }
 0x7dd   :  { %v577_v39 = vmul.f32 %v2559_v31, %v575_v38 }
 0x7df   :  { %579 = vrot.lane.b32.xlu1 %v577_v39, %s2803_s19 }
 0x851   :  { %v580_v40 = vpop.permute.xlu1 %579 }
 0x852   :  { %583 = vst.msk [vmem:[#allocation2 + $0x4] sm:$0x3] %vm372_vm3, %v580_v40  ;;  %2378 = vmatmul.mubr.msk.f32.vlgmr.msra.gmra.mxu0 %vm269_vm4, %v580_v40 }
 0x853   :  { %2392 = vmatpush3.msra.mxu0 %v2898_v21  ;;  %2399 = vmatprep.mubr.msk.f32.mxu0 %vm2801_vm0, %v2800_v4 }
 0x854   :  { %2393 = vmatprep.subr.mxu0 %v2800_v4 }
 0x855   :  { %2394 = vmatpush3.msra.mxu0 %v2900_v22 }
 0x856   :  { %2395 = vmatprep.subr.mxu0 %v2800_v4 }
 0x857   :  { %2396 = vmatpush3.msra.mxu0 %v2908_v26 }
 0x858   :  { %2397 = vmatprep.subr.mxu0 %v2800_v4 }
 0x859   :  { %2398 = vmatpush3.msra.mxu0 %v2912_v29  ;;  %v1117_v34 = vld [vmem:[#allocation2 + $0x4] sm:$0x3] }
 0x85a   :  { %2413 = vmatprep.subr.mxu0 %v2800_v4 }
 0x912   :  { %v654_v42 = vpop.f32.mrf.mxu0 }
 0x913   :  { %v658_v43 = vadd.f32 %v654_v42, %v585_v41  ;;  %v900_v42 = vld [vmem:[#allocation3 + $0xc] sm:$0x3] }
 0x914   :  { %v2379_v44 = vpop.f32.mrf.mxu0 }
 0x915   :  { %2562 = vtanh.f32 %v658_v43  ;;  %v2211_v46 = vmul.f32 -1.442695, %v658_v43 }
 0x917   :  { %2564 = vpow2.f32 %v2211_v46 }
 0x922   :  { %v2563_v45 = vpop.eup %2562 }
 0x923   :  { %668 = vrot.lane.b32.xlu0 %v2563_v45, %s2802_s3 }
 0x924   :  { %v2565_v47 = vpop.eup %2564 }
 0x925   :  { %v662_v48 = vadd.f32 1.0, %v2565_v47 }
 0x927   :  { %2566 = vrcp.f32 %v662_v48 }
 0x934   :  { %v2567_v49 = vpop.eup %2566 }
 0x935   :  { %v666_v52 = vmul.f32 %v2567_v49, %v571_v36  ;;  %v1115_v36 = vld [vmem:[#allocation2] sm:$0x3] }
 0x936   :  { %v1142_v37 = vcombine.low %v1115_v36, %v1116_v33 }
 0x938   :  { %v1150_v39 = vrot.slane %v1142_v37, %v2871_v6 }
 0x995   :  { %v669_v50 = vpop.permute.xlu0 %668 }
 0x996   :  { %v671_v51 = vmul.f32 %v2567_v49, %v669_v50 }
 0x998   :  { %673 = vrot.lane.b32.xlu1 %v671_v51, %s2803_s19 }
 0xa0a   :  { %v674_v53 = vpop.permute.xlu1 %673 }
 0xa0b   :  { %v676_v54 = vadd.f32 %v674_v53, %v666_v52 }
 0xa0d   :  { %2568 = vtanh.f32 %v676_v54 }
 0xa1a   :  { %v2569_v55 = vpop.eup %2568 }
 0xa1b   :  { %679 = vrot.lane.b32.xlu0 %v2569_v55, %s2802_s3 }
 0xa8d   :  { %v680_v56 = vpop.permute.xlu0 %679 }
 0xa8e   :  { %v682_v57 = vmul.f32 %v2567_v49, %v680_v56 }
 0xa90   :  { %684 = vrot.lane.b32.xlu1 %v682_v57, %s2803_s19 }
 0xb02   :  { %v685_v58 = vpop.permute.xlu1 %684 }
 0xb03   :  { %688 = vst.msk [vmem:[#allocation2 + $0x6] sm:$0x3] %vm372_vm3, %v685_v58  ;;  %2389 = vmatmul.mubr.msk.f32.vlgmr.msra.gmra.mxu1 %vm269_vm4, %v685_v58 }
 0xb04   :  { %2403 = vmatpush3.msra.mxu1 %v2898_v21  ;;  %2410 = vmatprep.mubr.msk.f32.mxu1 %vm2801_vm0, %v2800_v4 }
 0xb05   :  { %2404 = vmatprep.subr.mxu1 %v2800_v4 }
 0xb06   :  { %2405 = vmatpush3.msra.mxu1 %v2900_v22 }
 0xb07   :  { %2406 = vmatprep.subr.mxu1 %v2800_v4 }
 0xb08   :  { %2407 = vmatpush3.msra.mxu1 %v2908_v26 }
 0xb09   :  { %2408 = vmatprep.subr.mxu1 %v2800_v4 }
 0xb0a   :  { %2409 = vmatpush3.msra.mxu1 %v2912_v29  ;;  %v1118_v32 = vld [vmem:[#allocation2 + $0x6] sm:$0x3] }
 0xb0b   :  { %v1143_v35 = vcombine.low %v1117_v34, %v1118_v32 }
 0xb0d   :  { %v1157_v38 = vrot.slane %v1143_v35, %v2871_v6  ;;  %v2220_v35 = vld [vmem:[%s3238_s6] ss:$0 sm:$0xff]  ;;  %s2804_s6 = smov 96  }
 0xb0f   :  { %v1158_v41 = vcombine.low %v1150_v39, %v1157_v38 }
 0xbc3   :  { %v759_v60 = vpop.f32.mrf.mxu1 }
 0xbc4   :  { %v763_v61 = vadd.f32 %v759_v60, %v690_v59  ;;  %v1005_v60 = vld [vmem:[#allocation3 + $0xe] sm:$0x3] }
 0xbc5   :  { %v2390_v62 = vpop.f32.mrf.mxu1 }
 0xbc6   :  { %2570 = vtanh.f32 %v763_v61  ;;  %v2213_v0 = vmul.f32 -1.442695, %v763_v61 }
 0xbc8   :  { %2572 = vpow2.f32 %v2213_v0 }
 0xbd3   :  { %v2571_v63 = vpop.eup %2570 }
 0xbd4   :  { %773 = vrot.lane.b32.xlu0 %v2571_v63, %s2802_s3 }
 0xbd5   :  { %v2573_v1 = vpop.eup %2572 }
 0xbd6   :  { %v767_v2 = vadd.f32 1.0, %v2573_v1 }
 0xbd8   :  { %2574 = vrcp.f32 %v767_v2 }
 0xbe5   :  { %v2575_v3 = vpop.eup %2574 }
 0xbe6   :  { %v771_v8 = vmul.f32 %v2575_v3, %v676_v54 }
 0xc46   :  { %v774_v5 = vpop.permute.xlu0 %773 }
 0xc47   :  { %v776_v7 = vmul.f32 %v2575_v3, %v774_v5 }
 0xc49   :  { %778 = vrot.lane.b32.xlu1 %v776_v7, %s2803_s19 }
 0xcbb   :  { %v779_v9 = vpop.permute.xlu1 %778 }
 0xcbc   :  { %v781_v10 = vadd.f32 %v779_v9, %v771_v8 }
 0xcbe   :  { %2576 = vtanh.f32 %v781_v10 }
 0xccb   :  { %v2577_v11 = vpop.eup %2576 }
 0xccc   :  { %784 = vrot.lane.b32.xlu0 %v2577_v11, %s2802_s3 }
 0xd3e   :  { %v785_v12 = vpop.permute.xlu0 %784 }
 0xd3f   :  { %v787_v13 = vmul.f32 %v2575_v3, %v785_v12 }
 0xd41   :  { %789 = vrot.lane.b32.xlu1 %v787_v13, %s2803_s19  ;;  %v1126_v13 = vld [vmem:[#allocation9 + $0x18] sm:$0xff] }
 0xd42   :  { %2424 = vmatprep.subr.mxu1 %v1126_v13 }
 0xdb3   :  { %v790_v14 = vpop.permute.xlu1 %789 }
 0xdb4   :  { %793 = vst.msk [vmem:[#allocation2 + $0x8] sm:$0x3] %vm372_vm3, %v790_v14  ;;  %2400 = vmatmul.mubr.msk.f32.vlgmr.msra.gmra.mxu0 %vm269_vm4, %v790_v14  ;;  %v1125_v14 = vld [vmem:[#allocation9 + $0x10] sm:$0xff] }
 0xdb5   :  { %2414 = vmatpush3.msra.mxu0 %v2898_v21  ;;  %2421 = vmatprep.mubr.msk.f32.mxu0 %vm2801_vm0, %v2800_v4 }
 0xdb6   :  { %2415 = vmatprep.subr.mxu0 %v2800_v4 }
 0xdb7   :  { %2416 = vmatpush3.msra.mxu0 %v2900_v22 }
 0xdb8   :  { %2417 = vmatprep.subr.mxu0 %v2800_v4 }
 0xdb9   :  { %2418 = vmatpush3.msra.mxu0 %v2908_v26 }
 0xdba   :  { %2419 = vmatprep.subr.mxu0 %v2800_v4 }
 0xdbb   :  { %2420 = vmatpush3.msra.mxu0 %v2912_v29 }
 0xdbc   :  { %2435 = vmatprep.subr.mxu0 %v2800_v4 }
 0xe74   :  { %v864_v16 = vpop.f32.mrf.mxu0 }
 0xe75   :  { %v868_v21 = vadd.f32 %v864_v16, %v795_v15  ;;  %v1124_v15 = vld [vmem:[#allocation9 + $0x8] sm:$0xff]  ;;  %v1123_v16 = vld [vmem:[#allocation9] sm:$0xff] }
 0xe76   :  { %v2401_v17 = vpop.f32.mrf.mxu0 }
 0xe77   :  { %2578 = vtanh.f32 %v868_v21  ;;  %v2215_v19 = vmul.f32 -1.442695, %v868_v21 }
 0xe79   :  { %2580 = vpow2.f32 %v2215_v19  ;;  %v3058_v19 = vld [vmem:[%s3237_s5 + $0x10] sm:$0xff] }
 0xe84   :  { %v2579_v18 = vpop.eup %2578 }
 0xe85   :  { %878 = vrot.lane.b32.xlu0 %v2579_v18, %s2802_s3  ;;  %v3053_v18 = vld [vmem:[%s3237_s5 + $0x18] sm:$0xff] }
 0xe86   :  { %v2581_v22 = vpop.eup %2580 }
 0xe87   :  { %v872_v20 = vadd.f32 1.0, %v2581_v22  ;;  %v3065_v22 = vld [vmem:[%s3237_s5 + $0x8] sm:$0xff] }
 0xe89   :  { %2582 = vrcp.f32 %v872_v20  ;;  %v3072_v20 = vld [vmem:[%s3237_s5] sm:$0xff] }
 0xe96   :  { %v2583_v26 = vpop.eup %2582 }
 0xe97   :  { %v876_v29 = vmul.f32 %v2583_v26, %v781_v10 }
 0xef7   :  { %v879_v23 = vpop.permute.xlu0 %878 }
 0xef8   :  { %v881_v24 = vmul.f32 %v2583_v26, %v879_v23 }
 0xefa   :  { %883 = vrot.lane.b32.xlu1 %v881_v24, %s2803_s19  ;;  %v1119_v24 = vld [vmem:[#allocation2 + $0x8] sm:$0x3] }
 0xf6c   :  { %v884_v25 = vpop.permute.xlu1 %883 }
 0xf6d   :  { %v886_v27 = vadd.f32 %v884_v25, %v876_v29 }
 0xf6f   :  { %2584 = vtanh.f32 %v886_v27 }
 0xf7c   :  { %v2585_v28 = vpop.eup %2584 }
 0xf7d   :  { %889 = vrot.lane.b32.xlu0 %v2585_v28, %s2802_s3 }
 0xfef   :  { %v890_v30 = vpop.permute.xlu0 %889 }
 0xff0   :  { %v892_v31 = vmul.f32 %v2583_v26, %v890_v30 }
 0xff2   :  { %894 = vrot.lane.b32.xlu1 %v892_v31, %s2803_s19 }
0x1064   :  { %v895_v40 = vpop.permute.xlu1 %894 }
0x1065   :  { %898 = vst.msk [vmem:[#allocation2 + $0xa] sm:$0x3] %vm372_vm3, %v895_v40  ;;  %2411 = vmatmul.mubr.msk.f32.vlgmr.msra.gmra.mxu1 %vm269_vm4, %v895_v40 }
0x1066   :  { %2432 = vmatprep.mubr.msk.f32.mxu1 %vm269_vm4, %v1158_v41  ;;  %2425 = vmatpush3.msra.mxu1 %v1126_v13 }
0x1067   :  { %2426 = vmatprep.subr.mxu1 %v1125_v14 }
0x1068   :  { %2427 = vmatpush3.msra.mxu1 %v1125_v14 }
0x1069   :  { %2428 = vmatprep.subr.mxu1 %v1124_v15 }
0x106a   :  { %2429 = vmatpush3.msra.mxu1 %v1124_v15 }
0x106b   :  { %2430 = vmatprep.subr.mxu1 %v1123_v16 }
0x106c   :  { %2431 = vmatpush3.msra.mxu1 %v1123_v16  ;;  %v1120_v23 = vld [vmem:[#allocation2 + $0xa] sm:$0x3] }
0x106d   :  { %2446 = vmatprep.subr.mxu1 %v2800_v4  ;;  %v1159_v29 = vcombine.low %v1119_v24, %v1120_v23 }
0x106f   :  { %v1167_v30 = vrot.slane %v1159_v29, %v2871_v6 }
0x1125   :  { %v969_v43 = vpop.f32.mrf.mxu1 }
0x1126   :  { %v973_v44 = vadd.f32 %v969_v43, %v900_v42 }
0x1127   :  { %v2412_v45 = vpop.f32.mrf.mxu1 }
0x1128   :  { %2586 = vtanh.f32 %v973_v44  ;;  %v2217_v47 = vmul.f32 -1.442695, %v973_v44 }
0x112a   :  { %2588 = vpow2.f32 %v2217_v47 }
0x1135   :  { %v2587_v46 = vpop.eup %2586 }
0x1136   :  { %983 = vrot.lane.b32.xlu0 %v2587_v46, %s2802_s3 }
0x1137   :  { %v2589_v48 = vpop.eup %2588 }
0x1138   :  { %v977_v49 = vadd.f32 1.0, %v2589_v48 }
0x113a   :  { %2590 = vrcp.f32 %v977_v49 }
0x1147   :  { %v2591_v50 = vpop.eup %2590 }
0x1148   :  { %v981_v53 = vmul.f32 %v2591_v50, %v886_v27 }
0x11a8   :  { %v984_v51 = vpop.permute.xlu0 %983 }
0x11a9   :  { %v986_v52 = vmul.f32 %v2591_v50, %v984_v51 }
0x11ab   :  { %988 = vrot.lane.b32.xlu1 %v986_v52, %s2803_s19 }
0x121d   :  { %v989_v54 = vpop.permute.xlu1 %988 }
0x121e   :  { %v991_v55 = vadd.f32 %v989_v54, %v981_v53 }
0x1220   :  { %2592 = vtanh.f32 %v991_v55 }
0x122d   :  { %v2593_v56 = vpop.eup %2592 }
0x122e   :  { %994 = vrot.lane.b32.xlu0 %v2593_v56, %s2802_s3 }
0x12a0   :  { %v995_v57 = vpop.permute.xlu0 %994 }
0x12a1   :  { %v997_v58 = vmul.f32 %v2591_v50, %v995_v57 }
0x12a3   :  { %999 = vrot.lane.b32.xlu1 %v997_v58, %s2803_s19 }
0x1315   :  { %v1000_v59 = vpop.permute.xlu1 %999 }
0x1316   :  { %1003 = vst.msk [vmem:[#allocation2 + $0xc] sm:$0x3] %vm372_vm3, %v1000_v59  ;;  %2422 = vmatmul.mubr.msk.f32.vlgmr.msra.gmra.mxu0 %vm269_vm4, %v1000_v59 }
0x1317   :  { %2443 = vmatprep.mubr.msk.f32.mxu0 %vm2801_vm0, %v2800_v4  ;;  %2436 = vmatpush3.msra.mxu0 %v3053_v18 }
0x1318   :  { %2437 = vmatprep.subr.mxu0 %v2800_v4 }
0x1319   :  { %2438 = vmatpush3.msra.mxu0 %v3058_v19 }
0x131a   :  { %2439 = vmatprep.subr.mxu0 %v2800_v4 }
0x131b   :  { %2440 = vmatpush3.msra.mxu0 %v3065_v22 }
0x131c   :  { %2441 = vmatprep.subr.mxu0 %v2800_v4 }
0x131d   :  { %2442 = vmatpush3.msra.mxu0 %v3072_v20  ;;  %v1121_v25 = vld [vmem:[#allocation2 + $0xc] sm:$0x3] }
0x131e   :  { %2444 = vmatmul.mubr.f32.vlgmr.msra.gmra.mxu0 %v2800_v4  ;;  %2457 = vmatprep.subr.mxu0 %v2800_v4 }
0x131f   :  { %2458 = vmatpush3.msra.mxu0 %v3053_v18  ;;  %2465 = vmatprep.mubr.msk.f32.mxu0 %vm2801_vm0, %v2800_v4 }
0x1320   :  { %2459 = vmatprep.subr.mxu0 %v2800_v4 }
0x1321   :  { %2460 = vmatpush3.msra.mxu0 %v3058_v19 }
0x1322   :  { %2461 = vmatprep.subr.mxu0 %v2800_v4 }
0x1323   :  { %2462 = vmatpush3.msra.mxu0 %v3065_v22 }
0x1324   :  { %2463 = vmatprep.subr.mxu0 %v2800_v4 }
0x1325   :  { %2464 = vmatpush3.msra.mxu0 %v3072_v20 }
0x1326   :  { %2479 = vmatprep.subr.mxu0 %v2800_v4 }
0x13d6   :  { %v1074_v61 = vpop.f32.mrf.mxu0 }
0x13d7   :  { %v1078_v62 = vadd.f32 %v1074_v61, %v1005_v60 }
0x13d8   :  { %v2423_v63 = vpop.f32.mrf.mxu0 }
0x13d9   :  { %2594 = vtanh.f32 %v1078_v62  ;;  %v2219_v1 = vmul.f32 -1.442695, %v1078_v62 }
0x13db   :  { %2596 = vpow2.f32 %v2219_v1 }
0x13de   :  { %v1378_v33 = vpop.f32.mrf.mxu0 }
0x13e0   :  { %v2445_v34 = vpop.f32.mrf.mxu0 }
0x13e6   :  { %v2595_v0 = vpop.eup %2594 }
0x13e7   :  { %1088 = vrot.lane.b32.xlu0 %v2595_v0, %s2802_s3 }
0x13e8   :  { %v2597_v2 = vpop.eup %2596 }
0x13e9   :  { %v1082_v3 = vadd.f32 1.0, %v2597_v2 }
0x13eb   :  { %2598 = vrcp.f32 %v1082_v3 }
0x13f8   :  { %v2599_v5 = vpop.eup %2598 }
0x13f9   :  { %v1086_v9 = vmul.f32 %v2599_v5, %v991_v55 }
0x1459   :  { %v1089_v7 = vpop.permute.xlu0 %1088 }
0x145a   :  { %v1091_v8 = vmul.f32 %v2599_v5, %v1089_v7 }
0x145c   :  { %1093 = vrot.lane.b32.xlu1 %v1091_v8, %s2803_s19 }
0x14ce   :  { %v1094_v10 = vpop.permute.xlu1 %1093 }
0x14cf   :  { %v3044_v11 = vadd.f32 %v1094_v10, %v1086_v9 }
0x14d1   :  { %2600 = vtanh.f32 %v3044_v11 }
0x14de   :  { %v2601_v12 = vpop.eup %2600 }
0x14df   :  { %1099 = vrot.lane.b32.xlu0 %v2601_v12, %s2802_s3 }
0x1551   :  { %v1100_v21 = vpop.permute.xlu0 %1099 }
0x1552   :  { %v1102_v17 = vmul.f32 %v2599_v5, %v1100_v21 }
0x1554   :  { %1104 = vrot.lane.b32.xlu1 %v1102_v17, %s2803_s19 }
0x15c6   :  { %v1105_v26 = vpop.permute.xlu1 %1104 }
0x15c7   :  { %1108 = vst.msk [vmem:[#allocation2 + $0xe] sm:$0x3] %vm372_vm3, %v1105_v26  ;;  %1109 = vst.msk [vmem:[#allocation11] sm:$0x3] %vm372_vm3, %v1105_v26 }
0x15ce   :  { %v1122_v27 = vld [vmem:[#allocation2 + $0xe] sm:$0x3] }
0x15cf   :  { %v1160_v28 = vcombine.low %v1121_v25, %v1122_v27 }
0x15d1   :  { %v1174_v31 = vrot.slane %v1160_v28, %v2871_v6 }
0x15d3   :  { %v1175_v32 = vcombine.low %v1167_v30, %v1174_v31 }
0x15d5   :  { %2433 = vmatmul.mubr.msk.f32.vlgmr.msra.gmra.mxu1 %vm269_vm4, %v1175_v32 }
0x15d6   :  { %2447 = vmatpush3.msra.mxu1 %v3053_v18  ;;  %2454 = vmatprep.mubr.msk.f32.mxu1 %vm2801_vm0, %v2800_v4 }
0x15d7   :  { %2448 = vmatprep.subr.mxu1 %v2800_v4 }
0x15d8   :  { %2449 = vmatpush3.msra.mxu1 %v3058_v19 }
0x15d9   :  { %2450 = vmatprep.subr.mxu1 %v2800_v4 }
0x15da   :  { %2451 = vmatpush3.msra.mxu1 %v3065_v22 }
0x15db   :  { %2452 = vmatprep.subr.mxu1 %v2800_v4 }
0x15dc   :  { %2453 = vmatpush3.msra.mxu1 %v3072_v20 }
0x15dd   :  { %2468 = vmatprep.subr.mxu1 %v2800_v4 }
0x1695   :  { %v2434_v36 = vpop.f32.mrf.mxu1 }
0x1696   :  { %v1252_v37 = vadd.f32 %v2434_v36, %v2220_v35 }
0x1697   :  { %v1246_v38 = vpop.f32.mrf.mxu1 }
0x1698   :  { %v1274_v39 = vcombine.high %v1252_v37, %v1252_v37  ;;  %v1281_v40 = vrot.slane %v1252_v37, %v2871_v6  ;;  %2225 = vst.sshfl [vmem:[#allocation3 + $0x8] sm:$0x3 pattern:$0x76325410] %v1252_v37  ;;  %v1247_v41 = vadd.f32 %v2220_v35, %v1246_v38 }
0x169a   :  { %v1288_v42 = vrot.slane %v1274_v39, %v2871_v6  ;;  %v1289_v43 = vcombine.high %v1281_v40, %v1281_v40  ;;  %2226 = vst.sshfl [vmem:[#allocation3 + $0xc] sm:$0x3 pattern:$0x76325410] %v1274_v39  ;;  %v1257_v44 = vcombine.high %v1247_v41, %v1247_v41  ;;  %v1264_v45 = vrot.slane %v1247_v41, %v2871_v6 }
0x169b   :  { %2223 = vst.sshfl [vmem:[#allocation3] sm:$0x3 pattern:$0x76325410] %v1247_v41 }
0x169c   :  { %v1290_v46 = vcombine.high %v1288_v42, %v1288_v42  ;;  %1304 = vst [vmem:[#allocation3 + $0xa] sm:$0x3] %v1289_v43  ;;  %v1271_v47 = vrot.slane %v1257_v44, %v2871_v6  ;;  %v1272_v48 = vcombine.high %v1264_v45, %v1264_v45  ;;  %2224 = vst.sshfl [vmem:[#allocation3 + $0x4] sm:$0x3 pattern:$0x76325410] %v1257_v44 }
0x169e   :  { %1306 = vst [vmem:[#allocation3 + $0xe] sm:$0x3] %v1290_v46  ;;  %v1273_v49 = vcombine.high %v1271_v47, %v1271_v47  ;;  %1300 = vst [vmem:[#allocation3 + $0x2] sm:$0x3] %v1272_v48 }
0x16a0   :  { %1302 = vst [vmem:[#allocation3 + $0x6] sm:$0x3] %v1273_v49 }
0x16a2   :  { %v1311_v50 = vld [vmem:[#allocation3] sm:$0x3] }
0x16a3   :  { %v1382_v51 = vadd.f32 %v1378_v33, %v1311_v50  ;;  %v1516_v29 = vld [vmem:[#allocation3 + $0x4] sm:$0x3] }
0x16a5   :  { %2602 = vtanh.f32 %v1382_v51  ;;  %v2227_v53 = vmul.f32 -1.442695, %v1382_v51  ;;  %v1412_v1 = vld [vmem:[#allocation3 + $0x2] sm:$0x3] }
0x16a7   :  { %2604 = vpow2.f32 %v2227_v53  ;;  %v1620_v44 = vld [vmem:[#allocation3 + $0x6] sm:$0x3] }
0x16b2   :  { %v2603_v52 = vpop.eup %2602 }
0x16b3   :  { %1392 = vrot.lane.b32.xlu0 %v2603_v52, %s2802_s3 }
0x16b4   :  { %v2605_v54 = vpop.eup %2604 }
0x16b5   :  { %v1386_v55 = vadd.f32 1.0, %v2605_v54 }
0x16b7   :  { %2606 = vrcp.f32 %v1386_v55 }
0x16c4   :  { %v2607_v56 = vpop.eup %2606 }
0x16c5   :  { %v1390_v58 = vmul.f32 0.0, %v2607_v56 }
0x1725   :  { %v1393_v57 = vpop.permute.xlu0 %1392 }
0x1726   :  { %v1395_v6 = vmul.f32 %v2607_v56, %v1393_v57 }
0x1728   :  { %1397 = vrot.lane.b32.xlu1 %v1395_v6, %s2803_s19 }
0x179a   :  { %v1398_v59 = vpop.permute.xlu1 %1397 }
0x179b   :  { %v1400_v60 = vadd.f32 %v1398_v59, %v1390_v58 }
0x179d   :  { %2608 = vtanh.f32 %v1400_v60 }
0x17aa   :  { %v2609_v61 = vpop.eup %2608 }
0x17ab   :  { %1403 = vrot.lane.b32.xlu0 %v2609_v61, %s2802_s3  ;;  %v1724_v61 = vld [vmem:[#allocation3 + $0x8] sm:$0x3] }
0x181d   :  { %v1404_v62 = vpop.permute.xlu0 %1403 }
0x181e   :  { %v1406_v63 = vmul.f32 %v2607_v56, %v1404_v62 }
0x1820   :  { %1408 = vrot.lane.b32.xlu1 %v1406_v63, %s2803_s19 }
0x1892   :  { %v1409_v0 = vpop.permute.xlu1 %1408 }
0x1893   :  { %1411 = vst.msk [vmem:[#allocation10] sm:$0x3] %vm372_vm3, %v1409_v0  ;;  %2455 = vmatmul.mubr.msk.f32.vlgmr.msra.gmra.mxu1 %vm269_vm4, %v1409_v0 }
0x1894   :  { %2469 = vmatpush3.msra.mxu1 %v3053_v18  ;;  %2476 = vmatprep.mubr.msk.f32.mxu1 %vm2801_vm0, %v2800_v4 }
0x1895   :  { %2470 = vmatprep.subr.mxu1 %v2800_v4 }
0x1896   :  { %2471 = vmatpush3.msra.mxu1 %v3058_v19 }
0x1897   :  { %2472 = vmatprep.subr.mxu1 %v2800_v4 }
0x1898   :  { %2473 = vmatpush3.msra.mxu1 %v3065_v22 }
0x1899   :  { %2474 = vmatprep.subr.mxu1 %v2800_v4 }
0x189a   :  { %2475 = vmatpush3.msra.mxu1 %v3072_v20 }
0x189b   :  { %2490 = vmatprep.subr.mxu1 %v2800_v4 }
0x1953   :  { %v1481_v2 = vpop.f32.mrf.mxu1 }
0x1954   :  { %v1485_v3 = vadd.f32 %v1481_v2, %v1412_v1 }
0x1955   :  { %v2456_v5 = vpop.f32.mrf.mxu1 }
0x1956   :  { %2610 = vtanh.f32 %v1485_v3  ;;  %v2229_v8 = vmul.f32 -1.442695, %v1485_v3 }
0x1958   :  { %2612 = vpow2.f32 %v2229_v8 }
0x1963   :  { %v2611_v7 = vpop.eup %2610 }
0x1964   :  { %1495 = vrot.lane.b32.xlu0 %v2611_v7, %s2802_s3 }
0x1965   :  { %v2613_v9 = vpop.eup %2612 }
0x1966   :  { %v1489_v10 = vadd.f32 1.0, %v2613_v9 }
0x1968   :  { %2614 = vrcp.f32 %v1489_v10 }
0x1975   :  { %v2615_v12 = vpop.eup %2614 }
0x1976   :  { %v1493_v15 = vmul.f32 %v2615_v12, %v1400_v60 }
0x19d6   :  { %v1496_v13 = vpop.permute.xlu0 %1495 }
0x19d7   :  { %v1498_v14 = vmul.f32 %v2615_v12, %v1496_v13 }
0x19d9   :  { %1500 = vrot.lane.b32.xlu1 %v1498_v14, %s2803_s19 }
0x1a4b   :  { %v1501_v16 = vpop.permute.xlu1 %1500 }
0x1a4c   :  { %v1503_v21 = vadd.f32 %v1501_v16, %v1493_v15 }
0x1a4e   :  { %2616 = vtanh.f32 %v1503_v21 }
0x1a5b   :  { %v2617_v17 = vpop.eup %2616 }
0x1a5c   :  { %1506 = vrot.lane.b32.xlu0 %v2617_v17, %s2802_s3  ;;  %v1828_v17 = vld [vmem:[#allocation3 + $0xa] sm:$0x3] }
0x1ace   :  { %v1507_v26 = vpop.permute.xlu0 %1506 }
0x1acf   :  { %v1509_v23 = vmul.f32 %v2615_v12, %v1507_v26 }
0x1ad1   :  { %1511 = vrot.lane.b32.xlu1 %v1509_v23, %s2803_s19 }
0x1b43   :  { %v1512_v24 = vpop.permute.xlu1 %1511 }
0x1b44   :  { %1515 = vst.msk [vmem:[#allocation10 + $0x2] sm:$0x3] %vm372_vm3, %v1512_v24  ;;  %2466 = vmatmul.mubr.msk.f32.vlgmr.msra.gmra.mxu0 %vm269_vm4, %v1512_v24 }
0x1b45   :  { %2480 = vmatpush3.msra.mxu0 %v3053_v18  ;;  %2487 = vmatprep.mubr.msk.f32.mxu0 %vm2801_vm0, %v2800_v4 }
0x1b46   :  { %2481 = vmatprep.subr.mxu0 %v2800_v4 }
0x1b47   :  { %2482 = vmatpush3.msra.mxu0 %v3058_v19 }
0x1b48   :  { %2483 = vmatprep.subr.mxu0 %v2800_v4 }
0x1b49   :  { %2484 = vmatpush3.msra.mxu0 %v3065_v22 }
0x1b4a   :  { %2485 = vmatprep.subr.mxu0 %v2800_v4 }
0x1b4b   :  { %2486 = vmatpush3.msra.mxu0 %v3072_v20 }
0x1b4c   :  { %2501 = vmatprep.subr.mxu0 %v2800_v4 }
0x1c04   :  { %v1585_v25 = vpop.f32.mrf.mxu0 }
0x1c05   :  { %v1589_v27 = vadd.f32 %v1585_v25, %v1516_v29 }
0x1c06   :  { %v2467_v28 = vpop.f32.mrf.mxu0 }
0x1c07   :  { %2618 = vtanh.f32 %v1589_v27  ;;  %v2231_v31 = vmul.f32 -1.442695, %v1589_v27 }
0x1c09   :  { %2620 = vpow2.f32 %v2231_v31 }
0x1c14   :  { %v2619_v30 = vpop.eup %2618 }
0x1c15   :  { %1599 = vrot.lane.b32.xlu0 %v2619_v30, %s2802_s3 }
0x1c16   :  { %v2621_v32 = vpop.eup %2620 }
0x1c17   :  { %v1593_v33 = vadd.f32 1.0, %v2621_v32 }
0x1c19   :  { %2622 = vrcp.f32 %v1593_v33 }
0x1c26   :  { %v2623_v34 = vpop.eup %2622 }
0x1c27   :  { %v1597_v37 = vmul.f32 %v2623_v34, %v1503_v21 }
0x1c87   :  { %v1600_v35 = vpop.permute.xlu0 %1599 }
0x1c88   :  { %v1602_v36 = vmul.f32 %v2623_v34, %v1600_v35  ;;  %v1932_v35 = vld [vmem:[#allocation3 + $0xc] sm:$0x3] }
0x1c8a   :  { %1604 = vrot.lane.b32.xlu1 %v1602_v36, %s2803_s19 }
0x1cfc   :  { %v1605_v38 = vpop.permute.xlu1 %1604 }
0x1cfd   :  { %v1607_v39 = vadd.f32 %v1605_v38, %v1597_v37 }
0x1cff   :  { %2624 = vtanh.f32 %v1607_v39 }
0x1d0c   :  { %v2625_v40 = vpop.eup %2624 }
0x1d0d   :  { %1610 = vrot.lane.b32.xlu0 %v2625_v40, %s2802_s3 }
0x1d7f   :  { %v1611_v41 = vpop.permute.xlu0 %1610 }
0x1d80   :  { %v1613_v42 = vmul.f32 %v2623_v34, %v1611_v41 }
0x1d82   :  { %1615 = vrot.lane.b32.xlu1 %v1613_v42, %s2803_s19 }
0x1df4   :  { %v1616_v43 = vpop.permute.xlu1 %1615 }
0x1df5   :  { %1619 = vst.msk [vmem:[#allocation10 + $0x4] sm:$0x3] %vm372_vm3, %v1616_v43  ;;  %2477 = vmatmul.mubr.msk.f32.vlgmr.msra.gmra.mxu1 %vm269_vm4, %v1616_v43 }
0x1df6   :  { %2491 = vmatpush3.msra.mxu1 %v3053_v18  ;;  %2498 = vmatprep.mubr.msk.f32.mxu1 %vm2801_vm0, %v2800_v4 }
0x1df7   :  { %2492 = vmatprep.subr.mxu1 %v2800_v4 }
0x1df8   :  { %2493 = vmatpush3.msra.mxu1 %v3058_v19 }
0x1df9   :  { %2494 = vmatprep.subr.mxu1 %v2800_v4 }
0x1dfa   :  { %2495 = vmatpush3.msra.mxu1 %v3065_v22 }
0x1dfb   :  { %2496 = vmatprep.subr.mxu1 %v2800_v4 }
0x1dfc   :  { %2497 = vmatpush3.msra.mxu1 %v3072_v20 }
0x1dfd   :  { %2512 = vmatprep.subr.mxu1 %v2800_v4 }
0x1eb5   :  { %v1689_v45 = vpop.f32.mrf.mxu1 }
0x1eb6   :  { %v1693_v46 = vadd.f32 %v1689_v45, %v1620_v44 }
0x1eb7   :  { %v2478_v47 = vpop.f32.mrf.mxu1 }
0x1eb8   :  { %2626 = vtanh.f32 %v1693_v46  ;;  %v2233_v49 = vmul.f32 -1.442695, %v1693_v46 }
0x1eba   :  { %2628 = vpow2.f32 %v2233_v49 }
0x1ec5   :  { %v2627_v48 = vpop.eup %2626 }
0x1ec6   :  { %1703 = vrot.lane.b32.xlu0 %v2627_v48, %s2802_s3 }
0x1ec7   :  { %v2629_v50 = vpop.eup %2628 }
0x1ec8   :  { %v1697_v51 = vadd.f32 1.0, %v2629_v50 }
0x1eca   :  { %2630 = vrcp.f32 %v1697_v51 }
0x1ed7   :  { %v2631_v52 = vpop.eup %2630 }
0x1ed8   :  { %v1701_v55 = vmul.f32 %v2631_v52, %v1607_v39 }
0x1f38   :  { %v1704_v53 = vpop.permute.xlu0 %1703 }
0x1f39   :  { %v1706_v54 = vmul.f32 %v2631_v52, %v1704_v53  ;;  %v2036_v53 = vld [vmem:[#allocation3 + $0xe] sm:$0x3] }
0x1f3b   :  { %1708 = vrot.lane.b32.xlu1 %v1706_v54, %s2803_s19 }
0x1fad   :  { %v1709_v56 = vpop.permute.xlu1 %1708 }
0x1fae   :  { %v1711_v57 = vadd.f32 %v1709_v56, %v1701_v55 }
0x1fb0   :  { %2632 = vtanh.f32 %v1711_v57 }
0x1fbd   :  { %v2633_v6 = vpop.eup %2632 }
0x1fbe   :  { %1714 = vrot.lane.b32.xlu0 %v2633_v6, %s2802_s3 }
0x2030   :  { %v1715_v58 = vpop.permute.xlu0 %1714 }
0x2031   :  { %v1717_v59 = vmul.f32 %v2631_v52, %v1715_v58 }
0x2033   :  { %1719 = vrot.lane.b32.xlu1 %v1717_v59, %s2803_s19 }
0x20a5   :  { %v1720_v60 = vpop.permute.xlu1 %1719 }
0x20a6   :  { %1723 = vst.msk [vmem:[#allocation10 + $0x6] sm:$0x3] %vm372_vm3, %v1720_v60  ;;  %2488 = vmatmul.mubr.msk.f32.vlgmr.msra.gmra.mxu0 %vm269_vm4, %v1720_v60 }
0x20a7   :  { %2502 = vmatpush3.msra.mxu0 %v3053_v18  ;;  %2509 = vmatprep.mubr.msk.f32.mxu0 %vm2801_vm0, %v2800_v4 }
0x20a8   :  { %2503 = vmatprep.subr.mxu0 %v2800_v4 }
0x20a9   :  { %2504 = vmatpush3.msra.mxu0 %v3058_v19 }
0x20aa   :  { %2505 = vmatprep.subr.mxu0 %v2800_v4 }
0x20ab   :  { %2506 = vmatpush3.msra.mxu0 %v3065_v22 }
0x20ac   :  { %2507 = vmatprep.subr.mxu0 %v2800_v4 }
0x20ad   :  { %2508 = vmatpush3.msra.mxu0 %v3072_v20 }
0x2166   :  { %v1793_v62 = vpop.f32.mrf.mxu0 }
0x2167   :  { %v1797_v63 = vadd.f32 %v1793_v62, %v1724_v61 }
0x2168   :  { %v2489_v0 = vpop.f32.mrf.mxu0 }
0x2169   :  { %2634 = vtanh.f32 %v1797_v63  ;;  %v2235_v2 = vmul.f32 -1.442695, %v1797_v63 }
0x216b   :  { %2636 = vpow2.f32 %v2235_v2 }
0x2176   :  { %v2635_v1 = vpop.eup %2634 }
0x2177   :  { %1807 = vrot.lane.b32.xlu0 %v2635_v1, %s2802_s3 }
0x2178   :  { %v2637_v3 = vpop.eup %2636 }
0x2179   :  { %v1801_v5 = vadd.f32 1.0, %v2637_v3 }
0x217b   :  { %2638 = vrcp.f32 %v1801_v5 }
0x2188   :  { %v2639_v7 = vpop.eup %2638 }
0x2189   :  { %v1805_v10 = vmul.f32 %v2639_v7, %v1711_v57 }
0x21e9   :  { %v1808_v8 = vpop.permute.xlu0 %1807 }
0x21ea   :  { %v1810_v9 = vmul.f32 %v2639_v7, %v1808_v8 }
0x21ec   :  { %1812 = vrot.lane.b32.xlu1 %v1810_v9, %s2803_s19 }
0x225e   :  { %v1813_v12 = vpop.permute.xlu1 %1812 }
0x225f   :  { %v1815_v13 = vadd.f32 %v1813_v12, %v1805_v10 }
0x2261   :  { %2640 = vtanh.f32 %v1815_v13 }
0x226e   :  { %v2641_v14 = vpop.eup %2640 }
0x226f   :  { %1818 = vrot.lane.b32.xlu0 %v2641_v14, %s2802_s3 }
0x22e1   :  { %v1819_v15 = vpop.permute.xlu0 %1818 }
0x22e2   :  { %v1821_v16 = vmul.f32 %v2639_v7, %v1819_v15 }
0x22e4   :  { %1823 = vrot.lane.b32.xlu1 %v1821_v16, %s2803_s19 }
0x2356   :  { %v1824_v21 = vpop.permute.xlu1 %1823 }
0x2357   :  { %1827 = vst.msk [vmem:[#allocation10 + $0x8] sm:$0x3] %vm372_vm3, %v1824_v21  ;;  %2499 = vmatmul.mubr.msk.f32.vlgmr.msra.gmra.mxu1 %vm269_vm4, %v1824_v21 }
0x2358   :  { %2513 = vmatpush3.msra.mxu1 %v3053_v18  ;;  %2520 = vmatprep.mubr.msk.f32.mxu1 %vm2801_vm0, %v2800_v4 }
0x2359   :  { %2514 = vmatprep.subr.mxu1 %v2800_v4 }
0x235a   :  { %2515 = vmatpush3.msra.mxu1 %v3058_v19 }
0x235b   :  { %2516 = vmatprep.subr.mxu1 %v2800_v4 }
0x235c   :  { %2517 = vmatpush3.msra.mxu1 %v3065_v22 }
0x235d   :  { %2518 = vmatprep.subr.mxu1 %v2800_v4 }
0x235e   :  { %2519 = vmatpush3.msra.mxu1 %v3072_v20 }
0x2417   :  { %v1897_v26 = vpop.f32.mrf.mxu1 }
0x2418   :  { %v1901_v23 = vadd.f32 %v1897_v26, %v1828_v17 }
0x2419   :  { %v2500_v24 = vpop.f32.mrf.mxu1 }
0x241a   :  { %2642 = vtanh.f32 %v1901_v23  ;;  %v2237_v29 = vmul.f32 -1.442695, %v1901_v23 }
0x241c   :  { %2644 = vpow2.f32 %v2237_v29 }
0x2427   :  { %v2643_v18 = vpop.eup %2642 }
0x2428   :  { %1911 = vrot.lane.b32.xlu0 %v2643_v18, %s2802_s3 }
0x2429   :  { %v2645_v25 = vpop.eup %2644 }
0x242a   :  { %v1905_v19 = vadd.f32 1.0, %v2645_v25 }
0x242c   :  { %2646 = vrcp.f32 %v1905_v19 }
0x2439   :  { %v2647_v27 = vpop.eup %2646 }
0x243a   :  { %v1909_v4 = vmul.f32 %v2647_v27, %v1815_v13 }
0x249a   :  { %v1912_v28 = vpop.permute.xlu0 %1911 }
0x249b   :  { %v1914_v22 = vmul.f32 %v2647_v27, %v1912_v28 }
0x249d   :  { %1916 = vrot.lane.b32.xlu1 %v1914_v22, %s2803_s19 }
0x250f   :  { %v1917_v20 = vpop.permute.xlu1 %1916 }
0x2510   :  { %v1919_v30 = vadd.f32 %v1917_v20, %v1909_v4 }
0x2512   :  { %2648 = vtanh.f32 %v1919_v30 }
0x251f   :  { %v2649_v31 = vpop.eup %2648 }
0x2520   :  { %1922 = vrot.lane.b32.xlu0 %v2649_v31, %s2802_s3 }
0x2592   :  { %v1923_v32 = vpop.permute.xlu0 %1922 }
0x2593   :  { %v1925_v33 = vmul.f32 %v2647_v27, %v1923_v32 }
0x2595   :  { %1927 = vrot.lane.b32.xlu1 %v1925_v33, %s2803_s19 }
0x2607   :  { %v1928_v34 = vpop.permute.xlu1 %1927 }
0x2608   :  { %1931 = vst.msk [vmem:[#allocation10 + $0xa] sm:$0x3] %vm372_vm3, %v1928_v34  ;;  %2510 = vmatmul.mubr.msk.f32.vlgmr.msra.gmra.mxu0 %vm269_vm4, %v1928_v34 }
0x26c8   :  { %v2001_v36 = vpop.f32.mrf.mxu0 }
0x26c9   :  { %v2005_v37 = vadd.f32 %v2001_v36, %v1932_v35 }
0x26ca   :  { %v2511_v38 = vpop.f32.mrf.mxu0 }
0x26cb   :  { %2650 = vtanh.f32 %v2005_v37  ;;  %v2239_v40 = vmul.f32 -1.442695, %v2005_v37 }
0x26cd   :  { %2652 = vpow2.f32 %v2239_v40 }
0x26d8   :  { %v2651_v39 = vpop.eup %2650 }
0x26d9   :  { %2015 = vrot.lane.b32.xlu0 %v2651_v39, %s2802_s3 }
0x26da   :  { %v2653_v41 = vpop.eup %2652 }
0x26db   :  { %v2009_v42 = vadd.f32 1.0, %v2653_v41 }
0x26dd   :  { %2654 = vrcp.f32 %v2009_v42 }
0x26ea   :  { %v2655_v43 = vpop.eup %2654 }
0x26eb   :  { %v2013_v46 = vmul.f32 %v2655_v43, %v1919_v30 }
0x274b   :  { %v2016_v44 = vpop.permute.xlu0 %2015 }
0x274c   :  { %v2018_v45 = vmul.f32 %v2655_v43, %v2016_v44 }
0x274e   :  { %2020 = vrot.lane.b32.xlu1 %v2018_v45, %s2803_s19 }
0x27c0   :  { %v2021_v47 = vpop.permute.xlu1 %2020 }
0x27c1   :  { %v2023_v48 = vadd.f32 %v2021_v47, %v2013_v46 }
0x27c3   :  { %2656 = vtanh.f32 %v2023_v48 }
0x27d0   :  { %v2657_v49 = vpop.eup %2656 }
0x27d1   :  { %2026 = vrot.lane.b32.xlu0 %v2657_v49, %s2802_s3 }
0x2843   :  { %v2027_v50 = vpop.permute.xlu0 %2026 }
0x2844   :  { %v2029_v51 = vmul.f32 %v2655_v43, %v2027_v50 }
0x2846   :  { %2031 = vrot.lane.b32.xlu1 %v2029_v51, %s2803_s19 }
0x28b8   :  { %v2032_v52 = vpop.permute.xlu1 %2031 }
0x28b9   :  { %2035 = vst.msk [vmem:[#allocation10 + $0xc] sm:$0x3] %vm372_vm3, %v2032_v52  ;;  %2521 = vmatmul.mubr.msk.f32.vlgmr.msra.gmra.mxu1 %vm269_vm4, %v2032_v52 }
0x2979   :  { %v2105_v54 = vpop.f32.mrf.mxu1 }
0x297a   :  { %v2109_v55 = vadd.f32 %v2105_v54, %v2036_v53 }
0x297b   :  { %v2522_v56 = vpop.f32.mrf.mxu1 }
0x297c   :  { %2658 = vtanh.f32 %v2109_v55  ;;  %v2241_v6 = vmul.f32 -1.442695, %v2109_v55 }
0x297e   :  { %2660 = vpow2.f32 %v2241_v6 }
0x2989   :  { %v2659_v57 = vpop.eup %2658 }
0x298a   :  { %2119 = vrot.lane.b32.xlu0 %v2659_v57, %s2802_s3 }
0x298b   :  { %v2661_v58 = vpop.eup %2660 }
0x298c   :  { %v2113_v59 = vadd.f32 1.0, %v2661_v58 }
0x298e   :  { %2662 = vrcp.f32 %v2113_v59 }
0x299b   :  { %v2663_v60 = vpop.eup %2662 }
0x299c   :  { %v2117_v63 = vmul.f32 %v2663_v60, %v2023_v48 }
0x29fc   :  { %v2120_v61 = vpop.permute.xlu0 %2119 }
0x29fd   :  { %v2122_v62 = vmul.f32 %v2663_v60, %v2120_v61 }
0x29ff   :  { %2124 = vrot.lane.b32.xlu1 %v2122_v62, %s2803_s19 }
0x2a71   :  { %v2125_v0 = vpop.permute.xlu1 %2124 }
0x2a72   :  { %v2127_v1 = vadd.f32 %v2125_v0, %v2117_v63 }
0x2a74   :  { %2664 = vtanh.f32 %v2127_v1 }
0x2a81   :  { %v2665_v2 = vpop.eup %2664 }
0x2a82   :  { %2130 = vrot.lane.b32.xlu0 %v2665_v2, %s2802_s3 }
0x2a86   :  { %1111 = vrot.lane.b32.xlu0 %v3044_v11, %s2804_s6 }
0x2af4   :  { %v2131_v3 = vpop.permute.xlu0 %2130 }
0x2af5   :  { %v2133_v5 = vmul.f32 %v2663_v60, %v2131_v3 }
0x2af7   :  { %2135 = vrot.lane.b32.xlu1 %v2133_v5, %s2803_s19 }
0x2af8   :  { %v1112_v7 = vpop.permute.xlu0 %1111 }
0x2af9   :  { %1114 = vst.msk [vmem:[#allocation13] sm:$0x3] %vm372_vm3, %v1112_v7 }
0x2afb   :  { %2143 = vrot.lane.b32.xlu1 %v2127_v1, %s2804_s6 }
0x2b69   :  { %v2136_v8 = vpop.permute.xlu1 %2135 }
0x2b6a   :  { %2139 = vst.msk [vmem:[#allocation10 + $0xe] sm:$0x3] %vm372_vm3, %v2136_v8  ;;  %2141 = vst.msk [vmem:[#allocation11 + $0x2] sm:$0x3] %vm372_vm3, %v2136_v8 }
0x2b6b   :  { %2737 = shalt.err (!%p2734_p5)
}
0x2b6c   :  { %s2808_s12 = smov 2   ;;  %s2746_s15 = scalar_lea.vmem %s2154_s29, 256 }
0x2b6d   :  { %2171 = dma.vmem_to_hbm [thread:$0]  %s2166_s27, 64, %s3240_s8, [#allocation12], %s2803_s19, %s2803_s19, %s2808_s12  }
0x2b6e   :  { %p2747_p6 = scmp.ne.s32.totalorder %s2154_s29, %s2746_s15  ;;  %p2751_p7 = scmp.lt.s32.totalorder %s2154_s29, %s2154_s29 }
0x2b6f   :  { %p2752_p8 = scmp.lt.s32.totalorder %s2746_s15, %s2746_s15 }
0x2b71   :  { %p2753_p9 = por %p2752_p8, %p2751_p7 }
0x2b73   :  { %p2754_p10 = pnand %p2753_p9, %p2747_p6 }
0x2b75   :  { %2757 = shalt.err (!%p2754_p10)
}
0x2b76   :  { %2159 = dma.vmem_to_hbm [thread:$0]  %s2154_s29, 256, %s3239_s7, [#allocation6], %s2803_s19, %s2803_s19, %s2808_s12   ;;  %v2144_v11 = vpop.permute.xlu1 %2143 }
0x2b77   :  { %2147 = vst.msk [vmem:[#allocation13 + $0x2] sm:$0x3] %vm372_vm3, %v2144_v11  ;;  %s2766_s8 = scalar_lea.vmem %s3209_s10, 64  ;;  %p2771_p12 = scmp.lt.s32.totalorder %s3209_s10, %s3209_s10 }
0x2b78   :  { %p2767_p11 = scmp.ne.s32.totalorder %s3209_s10, %s2766_s8  ;;  %p2772_p13 = scmp.lt.s32.totalorder %s2766_s8, %s2766_s8 }
0x2b7a   :  { %p2773_p0 = por %p2772_p13, %p2771_p12 }
0x2b7c   :  { %p2774_p1 = pnand %p2773_p0, %p2767_p11 }
0x2b7e   :  { %2777 = shalt.err (!%p2774_p1)
}
0x2b7f   :  { %2183 = dma.vmem_to_hbm [thread:$0]  %s3209_s10, 64, %s3241_s9, [#allocation12], %s2803_s19, %s2803_s19, %s2808_s12  }
0x2b80   :  { %2790 = dma.done.wait [#allocation6], 256  }
0x2b81   :  { %2791 = vsyncadd [#allocation6], 4294967040 }
0x2b82   :  { %2792 = dma.done.wait [#allocation12], 128  }
0x2b83   :  { %2793 = vsyncadd [#allocation12], 4294967168 }
0x2b84   :  { %2193 = vsyncpa [#allocation5], 1 }
0x2b85   :  { %2194 = vsyncpa [#allocation8], 1 }
0x2b86   :  { %2195 = vsyncpa [#allocation6], 1 }
0x2b87   :  { %2196 = vsyncpa [#allocation12], 1 }

</bundles_post_ra>
